<compile_context>
chip_gen: v6e
topology: v6e:2x2x1
jax: 0.10.0
libtpu: 0.0.40
codegen_flags: <defaults>
</compile_context>

<pallas_src>
import functools

import jax
import jax.numpy as jnp
from jax.experimental import pallas as pl
from jax.experimental.pallas import tpu as pltpu

LATENT_DIM = 20
IN_DIM = 784
H1 = 400
H2 = 200


def _round_up(n, m):
    return ((n + m - 1) // m) * m


def _cdiv(a, b):
    return -(-a // b)


def _vae_kernel(x_ref, eps_ref,
                w1_ref, b1_ref, w2_ref, b2_ref,
                w3mu_ref, b3mu_ref, w3lv_ref, b3lv_ref,
                w4_ref, b4_ref, w5_ref, b5_ref, w6_ref, b6_ref,
                dec_ref, mu_ref, logvar_ref):
    """One batch tile of the fused VAE forward. Weights are VMEM-resident."""
    x = x_ref[...]                                              # (TB, 784) bf16

    # ---- encoder ----
    h = jnp.dot(x, w1_ref[...],
                preferred_element_type=jnp.float32) + b1_ref[...]
    h = jnp.maximum(h, 0.0).astype(jnp.bfloat16)                # (TB, 400) bf16
    h = jnp.dot(h, w2_ref[...],
                preferred_element_type=jnp.float32) + b2_ref[...]
    hb = jnp.maximum(h, 0.0).astype(jnp.bfloat16)               # (TB, 200) bf16

    mu = jnp.dot(hb, w3mu_ref[...],
                 preferred_element_type=jnp.float32) + b3mu_ref[...]   # (TB, 20)
    logvar = jnp.dot(hb, w3lv_ref[...],
                     preferred_element_type=jnp.float32) + b3lv_ref[...]

    # ---- reparameterize: z = mu + eps * exp(0.5 * logvar) ----
    z = mu + eps_ref[...] * jnp.exp(0.5 * logvar)               # (TB, 20) f32

    # ---- decoder ----
    d = jnp.dot(z.astype(jnp.bfloat16), w4_ref[...],
                preferred_element_type=jnp.float32) + b4_ref[...]
    d = jnp.maximum(d, 0.0).astype(jnp.bfloat16)                # (TB, 200)
    d = jnp.dot(d, w5_ref[...],
                preferred_element_type=jnp.float32) + b5_ref[...]
    d = jnp.maximum(d, 0.0).astype(jnp.bfloat16)                # (TB, 400)
    logits = jnp.dot(d, w6_ref[...],
                     preferred_element_type=jnp.float32) + b6_ref[...]

    dec_ref[...] = jax.nn.sigmoid(logits)                       # (TB, 784) f32
    mu_ref[...] = mu
    logvar_ref[...] = logvar


@functools.partial(jax.jit, static_argnames=("tb",))
def vae_forward(x, eps, params, *, tb=512):
    """x: (B, 1, 28, 28) (anything flattening to (B, 784)).
    eps: (B, latent_dim) standard-normal noise.
    Returns (dec_output, mu, logvar), matching the PyTorch module."""
    B = x.shape[0]
    # Activation input streamed in bf16 (kernel consumed bf16 anyway).
    x2d = x.reshape(B, IN_DIM).astype(jnp.bfloat16)
    eps = eps.astype(jnp.float32)

    # Batch tiling: minimize padding and keep grid >= 2 (when B is non-trivial)
    # so v7x's second TensorCore is used and DMAs pipeline against compute.
    num_tiles = _cdiv(B, tb)
    if B > 8:
        num_tiles = max(num_tiles, 2)
    tb_eff = _round_up(_cdiv(B, num_tiles), 8)
    Bp = num_tiles * tb_eff
    if Bp != B:
        pad = Bp - B
        x2d = jnp.pad(x2d, ((0, pad), (0, 0)))
        eps = jnp.pad(eps, ((0, pad), (0, 0)))
    grid = (num_tiles,)

    # Split the third encoder layer at trace time so the kernel never slices
    # at a non-lane-aligned offset.
    w3mu = params["w3"][:, :LATENT_DIM]
    w3lv = params["w3"][:, LATENT_DIM:]
    b3mu = params["b3"][:, :LATENT_DIM]
    b3lv = params["b3"][:, LATENT_DIM:]

    weight_args = (
        params["w1"], params["b1"], params["w2"], params["b2"],
        w3mu, b3mu, w3lv, b3lv,
        params["w4"], params["b4"], params["w5"], params["b5"],
        params["w6"], params["b6"],
    )

    def batch_spec(cols):
        return pl.BlockSpec((tb_eff, cols), lambda i: (i, 0))

    def resident_spec(arr):
        # Whole array as one block; same block index every grid step keeps it
        # resident in VMEM (single DMA across the whole grid).
        return pl.BlockSpec(arr.shape, lambda i: (0, 0))

    in_specs = ([batch_spec(IN_DIM), batch_spec(LATENT_DIM)]
                + [resident_spec(a) for a in weight_args])
    out_specs = (batch_spec(IN_DIM),
                 batch_spec(LATENT_DIM),
                 batch_spec(LATENT_DIM))

    # Advisory cost estimate so XLA schedules surrounding ops sensibly.
    w_elems = (IN_DIM * H1 + H1 * H2 + H2 * 2 * LATENT_DIM
               + LATENT_DIM * H2 + H2 * H1 + H1 * IN_DIM)
    b_elems = H1 + H2 + 2 * LATENT_DIM + H2 + H1 + IN_DIM
    cost = pl.CostEstimate(
        flops=2 * Bp * w_elems,
        transcendentals=Bp * (LATENT_DIM + IN_DIM),
        bytes_accessed=(w_elems * 2 + b_elems * 4
                        + Bp * (IN_DIM * 2 + LATENT_DIM * 4)        # inputs
                        + Bp * (IN_DIM + 2 * LATENT_DIM) * 4),      # outputs
    )

    dec, mu, logvar = pl.pallas_call(
        _vae_kernel,
        grid=grid,
        out_shape=(
            jax.ShapeDtypeStruct((Bp, IN_DIM), jnp.float32),
            jax.ShapeDtypeStruct((Bp, LATENT_DIM), jnp.float32),
            jax.ShapeDtypeStruct((Bp, LATENT_DIM), jnp.float32),
        ),
        in_specs=in_specs,
        out_specs=out_specs,
        compiler_params=pltpu.CompilerParams(
            dimension_semantics=("parallel",),
            vmem_limit_bytes=48 * 1024 * 1024),
        cost_estimate=cost,
    )(x2d, eps, *weight_args)

    return dec[:B], mu[:B], logvar[:B]


def init_params(key):
    """Deterministic synthetic parameters matching the nn.Linear layers.
    Weights stored as (in, out) in bfloat16; biases as (1, out) in float32."""
    shapes = [
        ("w1", (IN_DIM, H1)), ("b1", (1, H1)),
        ("w2", (H1, H2)),     ("b2", (1, H2)),
        ("w3", (H2, 2 * LATENT_DIM)), ("b3", (1, 2 * LATENT_DIM)),
        ("w4", (LATENT_DIM, H2)), ("b4", (1, H2)),
        ("w5", (H2, H1)),     ("b5", (1, H1)),
        ("w6", (H1, IN_DIM)), ("b6", (1, IN_DIM)),
    ]
    params = {}
    for name, shape in shapes:
        key, sub = jax.random.split(key)
        fan_in = shape[0] if name.startswith("w") else shape[1]
        bound = 1.0 / jnp.sqrt(jnp.float32(fan_in))
        w = jax.random.uniform(sub, shape, dtype=jnp.float32,
                               minval=-bound, maxval=bound)
        params[name] = w.astype(jnp.bfloat16) if name.startswith("w") else w
    return params


def ref_forward(x, eps, p):
    """Pure-JAX reference with the same dtype policy as the kernel
    (bf16 matmul operands, f32 accumulation, f32 elementwise)."""
    def lin(a, w, b):
        return jnp.dot(a.astype(jnp.bfloat16), w,
                       preferred_element_type=jnp.float32) + b
    x2 = x.reshape(-1, IN_DIM).astype(jnp.float32)
    h = jnp.maximum(lin(x2, p["w1"], p["b1"]), 0.0)
    h = jnp.maximum(lin(h, p["w2"], p["b2"]), 0.0)
    enc = lin(h, p["w3"], p["b3"])
    mu_r, lv_r = enc[:, :LATENT_DIM], enc[:, LATENT_DIM:]
    z = mu_r + eps * jnp.exp(0.5 * lv_r)
    d = jnp.maximum(lin(z, p["w4"], p["b4"]), 0.0)
    d = jnp.maximum(lin(d, p["w5"], p["b5"]), 0.0)
    return jax.nn.sigmoid(lin(d, p["w6"], p["b6"])), mu_r, lv_r


def _check(B, tb, k_x, k_eps, params):
    x = jax.random.uniform(k_x, (B, 1, 28, 28), dtype=jnp.float32)      # NCHW
    eps = jax.random.normal(k_eps, (B, LATENT_DIM), dtype=jnp.float32)  # randn_like
    dec, mu, logvar = vae_forward(x, eps, params, tb=tb)
    jax.block_until_ready((dec, mu, logvar))

    assert dec.shape == (B, IN_DIM)
    assert mu.shape == (B, LATENT_DIM)
    assert logvar.shape == (B, LATENT_DIM)
    assert bool(jnp.all((dec >= 0.0) & (dec <= 1.0)))

    dec_r, mu_r, lv_r = ref_forward(x, eps, params)
    assert jnp.allclose(dec, dec_r, atol=2e-3, rtol=2e-3)
    assert jnp.allclose(mu, mu_r, atol=2e-3, rtol=2e-3)
    assert jnp.allclose(logvar, lv_r, atol=2e-3, rtol=2e-3)


if __name__ == "__main__":
    key = jax.random.PRNGKey(0)
    k_param, k_x1, k_eps1, k_x2, k_eps2 = jax.random.split(key, 5)
    params = init_params(k_param)

    # small single-tile case (B=8, grid=(1,))
    _check(8, 512, k_x1, k_eps1, params)
    # multi-tile case exercising grid=2 + batch padding (B=24 -> 2 x 16 rows)
    _check(24, 16, k_x2, k_eps2, params)

    print("KERNEL_OK")
</pallas_src>

<mosaic_0001>
module attributes {stable_mosaic.version = 11 : i64} {
  func.func @_vae_kernel(%arg0: i32, %arg1: memref<8x784xbf16, #tpu.memory_space<vmem>>, %arg2: memref<8x20xf32, #tpu.memory_space<vmem>>, %arg3: memref<784x400xbf16, #tpu.memory_space<vmem>>, %arg4: memref<1x400xf32, #tpu.memory_space<vmem>>, %arg5: memref<400x200xbf16, #tpu.memory_space<vmem>>, %arg6: memref<1x200xf32, #tpu.memory_space<vmem>>, %arg7: memref<200x20xbf16, #tpu.memory_space<vmem>>, %arg8: memref<1x20xf32, #tpu.memory_space<vmem>>, %arg9: memref<200x20xbf16, #tpu.memory_space<vmem>>, %arg10: memref<1x20xf32, #tpu.memory_space<vmem>>, %arg11: memref<20x200xbf16, #tpu.memory_space<vmem>>, %arg12: memref<1x200xf32, #tpu.memory_space<vmem>>, %arg13: memref<200x400xbf16, #tpu.memory_space<vmem>>, %arg14: memref<1x400xf32, #tpu.memory_space<vmem>>, %arg15: memref<400x784xbf16, #tpu.memory_space<vmem>>, %arg16: memref<1x784xf32, #tpu.memory_space<vmem>>, %arg17: memref<8x784xf32, #tpu.memory_space<vmem>>, %arg18: memref<8x20xf32, #tpu.memory_space<vmem>>, %arg19: memref<8x20xf32, #tpu.memory_space<vmem>>) attributes {dimension_semantics = [#tpu.dimension_semantics<parallel>], iteration_bounds = array<i64: 1>, scalar_prefetch = 0 : i64, scratch_operands = 0 : i64, tpu.core_type = #tpu.core_type<tc>, window_params = [{transform_indices = @transform_0, window_bounds = array<i64: 8, 784>}, {transform_indices = @transform_1, window_bounds = array<i64: 8, 20>}, {pipeline_mode = #tpu.pipeline_mode<synchronous>, transform_indices = @transform_2, window_bounds = array<i64: 784, 400>}, {pipeline_mode = #tpu.pipeline_mode<synchronous>, transform_indices = @transform_3, window_bounds = array<i64: 1, 400>}, {pipeline_mode = #tpu.pipeline_mode<synchronous>, transform_indices = @transform_4, window_bounds = array<i64: 400, 200>}, {pipeline_mode = #tpu.pipeline_mode<synchronous>, transform_indices = @transform_5, window_bounds = array<i64: 1, 200>}, {pipeline_mode = #tpu.pipeline_mode<synchronous>, transform_indices = @transform_6, window_bounds = array<i64: 200, 20>}, {pipeline_mode = #tpu.pipeline_mode<synchronous>, transform_indices = @transform_7, window_bounds = array<i64: 1, 20>}, {pipeline_mode = #tpu.pipeline_mode<synchronous>, transform_indices = @transform_8, window_bounds = array<i64: 200, 20>}, {pipeline_mode = #tpu.pipeline_mode<synchronous>, transform_indices = @transform_9, window_bounds = array<i64: 1, 20>}, {pipeline_mode = #tpu.pipeline_mode<synchronous>, transform_indices = @transform_10, window_bounds = array<i64: 20, 200>}, {pipeline_mode = #tpu.pipeline_mode<synchronous>, transform_indices = @transform_11, window_bounds = array<i64: 1, 200>}, {pipeline_mode = #tpu.pipeline_mode<synchronous>, transform_indices = @transform_12, window_bounds = array<i64: 200, 400>}, {pipeline_mode = #tpu.pipeline_mode<synchronous>, transform_indices = @transform_13, window_bounds = array<i64: 1, 400>}, {pipeline_mode = #tpu.pipeline_mode<synchronous>, transform_indices = @transform_14, window_bounds = array<i64: 400, 784>}, {pipeline_mode = #tpu.pipeline_mode<synchronous>, transform_indices = @transform_15, window_bounds = array<i64: 1, 784>}, {transform_indices = @transform_16, window_bounds = array<i64: 8, 784>}, {transform_indices = @transform_17, window_bounds = array<i64: 8, 20>}, {transform_indices = @transform_18, window_bounds = array<i64: 8, 20>}]} {
    %c0 = arith.constant 0 : index
    %c0_0 = arith.constant 0 : index
    %0 = vector.load %arg1[%c0, %c0_0] : memref<8x784xbf16, #tpu.memory_space<vmem>>, vector<8x784xbf16>
    %c0_1 = arith.constant 0 : index
    %c0_2 = arith.constant 0 : index
    %1 = vector.load %arg3[%c0_1, %c0_2] : memref<784x400xbf16, #tpu.memory_space<vmem>>, vector<784x400xbf16>
    %cst = arith.constant dense<0.000000e+00> : vector<8x400xf32>
    %2 = tpu.matmul %0, %1, %cst {dimension_numbers = #tpu.dot_dimension_numbers<[1], [0], [0], [1], [0, 0, 1, 1], [], []>} : vector<8x784xbf16>, vector<784x400xbf16>, vector<8x400xf32> -> vector<8x400xf32>
    %c0_3 = arith.constant 0 : index
    %c0_4 = arith.constant 0 : index
    %3 = vector.load %arg4[%c0_3, %c0_4] : memref<1x400xf32, #tpu.memory_space<vmem>>, vector<1x400xf32>
    %4 = vector.broadcast %3 : vector<1x400xf32> to vector<8x400xf32>
    %5 = arith.addf %2, %4 : vector<8x400xf32>
    %cst_5 = arith.constant 0.000000e+00 : f32
    %6 = vector.broadcast %cst_5 : f32 to vector<8x400xf32>
    %7 = arith.maximumf %5, %6 : vector<8x400xf32>
    %8 = arith.truncf %7 : vector<8x400xf32> to vector<8x400xbf16>
    %c0_6 = arith.constant 0 : index
    %c0_7 = arith.constant 0 : index
    %9 = vector.load %arg5[%c0_6, %c0_7] : memref<400x200xbf16, #tpu.memory_space<vmem>>, vector<400x200xbf16>
    %cst_8 = arith.constant dense<0.000000e+00> : vector<8x200xf32>
    %10 = tpu.matmul %8, %9, %cst_8 {dimension_numbers = #tpu.dot_dimension_numbers<[1], [0], [0], [1], [0, 0, 1, 1], [], []>} : vector<8x400xbf16>, vector<400x200xbf16>, vector<8x200xf32> -> vector<8x200xf32>
    %c0_9 = arith.constant 0 : index
    %c0_10 = arith.constant 0 : index
    %11 = vector.load %arg6[%c0_9, %c0_10] : memref<1x200xf32, #tpu.memory_space<vmem>>, vector<1x200xf32>
    %12 = vector.broadcast %11 : vector<1x200xf32> to vector<8x200xf32>
    %13 = arith.addf %10, %12 : vector<8x200xf32>
    %cst_11 = arith.constant 0.000000e+00 : f32
    %14 = vector.broadcast %cst_11 : f32 to vector<8x200xf32>
    %15 = arith.maximumf %13, %14 : vector<8x200xf32>
    %16 = arith.truncf %15 : vector<8x200xf32> to vector<8x200xbf16>
    %c0_12 = arith.constant 0 : index
    %c0_13 = arith.constant 0 : index
    %17 = vector.load %arg7[%c0_12, %c0_13] : memref<200x20xbf16, #tpu.memory_space<vmem>>, vector<200x20xbf16>
    %cst_14 = arith.constant dense<0.000000e+00> : vector<8x20xf32>
    %18 = tpu.matmul %16, %17, %cst_14 {dimension_numbers = #tpu.dot_dimension_numbers<[1], [0], [0], [1], [0, 0, 1, 1], [], []>} : vector<8x200xbf16>, vector<200x20xbf16>, vector<8x20xf32> -> vector<8x20xf32>
    %c0_15 = arith.constant 0 : index
    %c0_16 = arith.constant 0 : index
    %19 = vector.load %arg8[%c0_15, %c0_16] : memref<1x20xf32, #tpu.memory_space<vmem>>, vector<1x20xf32>
    %20 = vector.broadcast %19 : vector<1x20xf32> to vector<8x20xf32>
    %21 = arith.addf %18, %20 : vector<8x20xf32>
    %c0_17 = arith.constant 0 : index
    %c0_18 = arith.constant 0 : index
    %22 = vector.load %arg9[%c0_17, %c0_18] : memref<200x20xbf16, #tpu.memory_space<vmem>>, vector<200x20xbf16>
    %cst_19 = arith.constant dense<0.000000e+00> : vector<8x20xf32>
    %23 = tpu.matmul %16, %22, %cst_19 {dimension_numbers = #tpu.dot_dimension_numbers<[1], [0], [0], [1], [0, 0, 1, 1], [], []>} : vector<8x200xbf16>, vector<200x20xbf16>, vector<8x20xf32> -> vector<8x20xf32>
    %c0_20 = arith.constant 0 : index
    %c0_21 = arith.constant 0 : index
    %24 = vector.load %arg10[%c0_20, %c0_21] : memref<1x20xf32, #tpu.memory_space<vmem>>, vector<1x20xf32>
    %25 = vector.broadcast %24 : vector<1x20xf32> to vector<8x20xf32>
    %26 = arith.addf %23, %25 : vector<8x20xf32>
    %c0_22 = arith.constant 0 : index
    %c0_23 = arith.constant 0 : index
    %27 = vector.load %arg2[%c0_22, %c0_23] : memref<8x20xf32, #tpu.memory_space<vmem>>, vector<8x20xf32>
    %cst_24 = arith.constant 5.000000e-01 : f32
    %28 = vector.broadcast %cst_24 : f32 to vector<8x20xf32>
    %29 = arith.mulf %28, %26 : vector<8x20xf32>
    %30 = math.exp %29 : vector<8x20xf32>
    %31 = arith.mulf %27, %30 : vector<8x20xf32>
    %32 = arith.addf %21, %31 : vector<8x20xf32>
    %33 = arith.truncf %32 : vector<8x20xf32> to vector<8x20xbf16>
    %c0_25 = arith.constant 0 : index
    %c0_26 = arith.constant 0 : index
    %34 = vector.load %arg11[%c0_25, %c0_26] : memref<20x200xbf16, #tpu.memory_space<vmem>>, vector<20x200xbf16>
    %cst_27 = arith.constant dense<0.000000e+00> : vector<8x200xf32>
    %35 = tpu.matmul %33, %34, %cst_27 {dimension_numbers = #tpu.dot_dimension_numbers<[1], [0], [0], [1], [0, 0, 1, 1], [], []>} : vector<8x20xbf16>, vector<20x200xbf16>, vector<8x200xf32> -> vector<8x200xf32>
    %c0_28 = arith.constant 0 : index
    %c0_29 = arith.constant 0 : index
    %36 = vector.load %arg12[%c0_28, %c0_29] : memref<1x200xf32, #tpu.memory_space<vmem>>, vector<1x200xf32>
    %37 = vector.broadcast %36 : vector<1x200xf32> to vector<8x200xf32>
    %38 = arith.addf %35, %37 : vector<8x200xf32>
    %cst_30 = arith.constant 0.000000e+00 : f32
    %39 = vector.broadcast %cst_30 : f32 to vector<8x200xf32>
    %40 = arith.maximumf %38, %39 : vector<8x200xf32>
    %41 = arith.truncf %40 : vector<8x200xf32> to vector<8x200xbf16>
    %c0_31 = arith.constant 0 : index
    %c0_32 = arith.constant 0 : index
    %42 = vector.load %arg13[%c0_31, %c0_32] : memref<200x400xbf16, #tpu.memory_space<vmem>>, vector<200x400xbf16>
    %cst_33 = arith.constant dense<0.000000e+00> : vector<8x400xf32>
    %43 = tpu.matmul %41, %42, %cst_33 {dimension_numbers = #tpu.dot_dimension_numbers<[1], [0], [0], [1], [0, 0, 1, 1], [], []>} : vector<8x200xbf16>, vector<200x400xbf16>, vector<8x400xf32> -> vector<8x400xf32>
    %c0_34 = arith.constant 0 : index
    %c0_35 = arith.constant 0 : index
    %44 = vector.load %arg14[%c0_34, %c0_35] : memref<1x400xf32, #tpu.memory_space<vmem>>, vector<1x400xf32>
    %45 = vector.broadcast %44 : vector<1x400xf32> to vector<8x400xf32>
    %46 = arith.addf %43, %45 : vector<8x400xf32>
    %cst_36 = arith.constant 0.000000e+00 : f32
    %47 = vector.broadcast %cst_36 : f32 to vector<8x400xf32>
    %48 = arith.maximumf %46, %47 : vector<8x400xf32>
    %49 = arith.truncf %48 : vector<8x400xf32> to vector<8x400xbf16>
    %c0_37 = arith.constant 0 : index
    %c0_38 = arith.constant 0 : index
    %50 = vector.load %arg15[%c0_37, %c0_38] : memref<400x784xbf16, #tpu.memory_space<vmem>>, vector<400x784xbf16>
    %cst_39 = arith.constant dense<0.000000e+00> : vector<8x784xf32>
    %51 = tpu.matmul %49, %50, %cst_39 {dimension_numbers = #tpu.dot_dimension_numbers<[1], [0], [0], [1], [0, 0, 1, 1], [], []>} : vector<8x400xbf16>, vector<400x784xbf16>, vector<8x784xf32> -> vector<8x784xf32>
    %c0_40 = arith.constant 0 : index
    %c0_41 = arith.constant 0 : index
    %52 = vector.load %arg16[%c0_40, %c0_41] : memref<1x784xf32, #tpu.memory_space<vmem>>, vector<1x784xf32>
    %53 = vector.broadcast %52 : vector<1x784xf32> to vector<8x784xf32>
    %54 = arith.addf %51, %53 : vector<8x784xf32>
    %55 = arith.negf %54 : vector<8x784xf32>
    %56 = math.exp %55 : vector<8x784xf32>
    %cst_42 = arith.constant 1.000000e+00 : f32
    %57 = vector.broadcast %cst_42 : f32 to vector<8x784xf32>
    %58 = arith.addf %57, %56 : vector<8x784xf32>
    %59 = arith.divf %57, %58 : vector<8x784xf32>
    %c0_43 = arith.constant 0 : index
    %c0_44 = arith.constant 0 : index
    %60 = vector.load %arg17[%c0_43, %c0_44] : memref<8x784xf32, #tpu.memory_space<vmem>>, vector<8x784xf32>
    tpu.vector_store %arg17[%c0_43, %c0_44], %59 {strides = array<i32>} : memref<8x784xf32, #tpu.memory_space<vmem>>, vector<8x784xf32>,
    %c0_45 = arith.constant 0 : index
    %c0_46 = arith.constant 0 : index
    %61 = vector.load %arg18[%c0_45, %c0_46] : memref<8x20xf32, #tpu.memory_space<vmem>>, vector<8x20xf32>
    tpu.vector_store %arg18[%c0_45, %c0_46], %21 {strides = array<i32>} : memref<8x20xf32, #tpu.memory_space<vmem>>, vector<8x20xf32>,
    %c0_47 = arith.constant 0 : index
    %c0_48 = arith.constant 0 : index
    %62 = vector.load %arg19[%c0_47, %c0_48] : memref<8x20xf32, #tpu.memory_space<vmem>>, vector<8x20xf32>
    tpu.vector_store %arg19[%c0_47, %c0_48], %26 {strides = array<i32>} : memref<8x20xf32, #tpu.memory_space<vmem>>, vector<8x20xf32>,
    return
  }
  func.func @transform_0(%arg0: i32) -> (i32, i32) {
    %c0_i32 = arith.constant 0 : i32
    %c0_i32_0 = arith.constant 0 : i32
    return %arg0, %c0_i32 : i32, i32
  }
  func.func @transform_1(%arg0: i32) -> (i32, i32) {
    %c0_i32 = arith.constant 0 : i32
    %c0_i32_0 = arith.constant 0 : i32
    return %arg0, %c0_i32 : i32, i32
  }
  func.func @transform_2(%arg0: i32) -> (i32, i32) {
    %c0_i32 = arith.constant 0 : i32
    %c0_i32_0 = arith.constant 0 : i32
    %c0_i32_1 = arith.constant 0 : i32
    return %c0_i32, %c0_i32_0 : i32, i32
  }
  func.func @transform_3(%arg0: i32) -> (i32, i32) {
    %c0_i32 = arith.constant 0 : i32
    %c0_i32_0 = arith.constant 0 : i32
    %c0_i32_1 = arith.constant 0 : i32
    return %c0_i32, %c0_i32_0 : i32, i32
  }
  func.func @transform_4(%arg0: i32) -> (i32, i32) {
    %c0_i32 = arith.constant 0 : i32
    %c0_i32_0 = arith.constant 0 : i32
    %c0_i32_1 = arith.constant 0 : i32
    return %c0_i32, %c0_i32_0 : i32, i32
  }
  func.func @transform_5(%arg0: i32) -> (i32, i32) {
    %c0_i32 = arith.constant 0 : i32
    %c0_i32_0 = arith.constant 0 : i32
    %c0_i32_1 = arith.constant 0 : i32
    return %c0_i32, %c0_i32_0 : i32, i32
  }
  func.func @transform_6(%arg0: i32) -> (i32, i32) {
    %c0_i32 = arith.constant 0 : i32
    %c0_i32_0 = arith.constant 0 : i32
    %c0_i32_1 = arith.constant 0 : i32
    return %c0_i32, %c0_i32_0 : i32, i32
  }
  func.func @transform_7(%arg0: i32) -> (i32, i32) {
    %c0_i32 = arith.constant 0 : i32
    %c0_i32_0 = arith.constant 0 : i32
    %c0_i32_1 = arith.constant 0 : i32
    return %c0_i32, %c0_i32_0 : i32, i32
  }
  func.func @transform_8(%arg0: i32) -> (i32, i32) {
    %c0_i32 = arith.constant 0 : i32
    %c0_i32_0 = arith.constant 0 : i32
    %c0_i32_1 = arith.constant 0 : i32
    return %c0_i32, %c0_i32_0 : i32, i32
  }
  func.func @transform_9(%arg0: i32) -> (i32, i32) {
    %c0_i32 = arith.constant 0 : i32
    %c0_i32_0 = arith.constant 0 : i32
    %c0_i32_1 = arith.constant 0 : i32
    return %c0_i32, %c0_i32_0 : i32, i32
  }
  func.func @transform_10(%arg0: i32) -> (i32, i32) {
    %c0_i32 = arith.constant 0 : i32
    %c0_i32_0 = arith.constant 0 : i32
    %c0_i32_1 = arith.constant 0 : i32
    return %c0_i32, %c0_i32_0 : i32, i32
  }
  func.func @transform_11(%arg0: i32) -> (i32, i32) {
    %c0_i32 = arith.constant 0 : i32
    %c0_i32_0 = arith.constant 0 : i32
    %c0_i32_1 = arith.constant 0 : i32
    return %c0_i32, %c0_i32_0 : i32, i32
  }
  func.func @transform_12(%arg0: i32) -> (i32, i32) {
    %c0_i32 = arith.constant 0 : i32
    %c0_i32_0 = arith.constant 0 : i32
    %c0_i32_1 = arith.constant 0 : i32
    return %c0_i32, %c0_i32_0 : i32, i32
  }
  func.func @transform_13(%arg0: i32) -> (i32, i32) {
    %c0_i32 = arith.constant 0 : i32
    %c0_i32_0 = arith.constant 0 : i32
    %c0_i32_1 = arith.constant 0 : i32
    return %c0_i32, %c0_i32_0 : i32, i32
  }
  func.func @transform_14(%arg0: i32) -> (i32, i32) {
    %c0_i32 = arith.constant 0 : i32
    %c0_i32_0 = arith.constant 0 : i32
    %c0_i32_1 = arith.constant 0 : i32
    return %c0_i32, %c0_i32_0 : i32, i32
  }
  func.func @transform_15(%arg0: i32) -> (i32, i32) {
    %c0_i32 = arith.constant 0 : i32
    %c0_i32_0 = arith.constant 0 : i32
    %c0_i32_1 = arith.constant 0 : i32
    return %c0_i32, %c0_i32_0 : i32, i32
  }
  func.func @transform_16(%arg0: i32) -> (i32, i32) {
    %c0_i32 = arith.constant 0 : i32
    %c0_i32_0 = arith.constant 0 : i32
    return %arg0, %c0_i32 : i32, i32
  }
  func.func @transform_17(%arg0: i32) -> (i32, i32) {
    %c0_i32 = arith.constant 0 : i32
    %c0_i32_0 = arith.constant 0 : i32
    return %arg0, %c0_i32 : i32, i32
  }
  func.func @transform_18(%arg0: i32) -> (i32, i32) {
    %c0_i32 = arith.constant 0 : i32
    %c0_i32_0 = arith.constant 0 : i32
    return %arg0, %c0_i32 : i32, i32
  }
}

</mosaic_0001>

<bundles_post_ra>
// kernel: vae_forward.1
= control target key start
LH: loop header
LB: loop body
LE: loop exit
PB: predicated region body
PF: predicated region fallthrough
CT: control target
= control target key end

     0   :  { %s7601_s0 = inlined_call_operand.vmem [shape: bf16[8,784], index: 0, kind: input, shape index: {}]   ;;  %s7602_s1 = inlined_call_operand.vmem [shape: f32[8,20], index: 1, kind: input, shape index: {}]   ;;  %s7603_s2 = inlined_call_operand.vmem [shape: bf16[784,400], index: 2, kind: input, shape index: {}]   ;;  %s7604_s3 = inlined_call_operand.vmem [shape: f32[1,400], index: 3, kind: input, shape index: {}]   ;;  %s7605_s4 = inlined_call_operand.vmem [shape: bf16[400,200], index: 4, kind: input, shape index: {}]   ;;  %s7606_s5 = inlined_call_operand.vmem [shape: f32[1,200], index: 5, kind: input, shape index: {}]   ;;  %s7607_s6 = inlined_call_operand.vmem [shape: bf16[200,20], index: 6, kind: input, shape index: {}]   ;;  %s7608_s7 = inlined_call_operand.vmem [shape: f32[1,20], index: 7, kind: input, shape index: {}]   ;;  %s7609_s8 = inlined_call_operand.vmem [shape: bf16[200,20], index: 8, kind: input, shape index: {}]   ;;  %s7610_s9 = inlined_call_operand.vmem [shape: f32[1,20], index: 9, kind: input, shape index: {}]   ;;  %s7611_s10 = inlined_call_operand.vmem [shape: bf16[20,200], index: 10, kind: input, shape index: {}]   ;;  %s7612_s11 = inlined_call_operand.vmem [shape: f32[1,200], index: 11, kind: input, shape index: {}]   ;;  %s7613_s12 = inlined_call_operand.vmem [shape: bf16[200,400], index: 12, kind: input, shape index: {}]   ;;  %s7614_s13 = inlined_call_operand.vmem [shape: f32[1,400], index: 13, kind: input, shape index: {}]   ;;  %s7615_s14 = inlined_call_operand.vmem [shape: bf16[400,784], index: 14, kind: input, shape index: {}]   ;;  %s7616_s15 = inlined_call_operand.vmem [shape: f32[1,784], index: 15, kind: input, shape index: {}]   ;;  %s7617_s16 = inlined_call_operand.hbm [shape: f32[8,784], index: 16, kind: output, shape index: {0}]   ;;  %s7618_s17 = inlined_call_operand.hbm [shape: f32[8,20], index: 17, kind: output, shape index: {1}]   ;;  %s7619_s18 = inlined_call_operand.hbm [shape: f32[8,20], index: 18, kind: output, shape index: {2}]  }
   0x1   :  { %7622 = sst [smem:[#allocation9_spill]] %s7601_s0 }
   0x2   :  { %7623 = sst [smem:[#allocation10_spill]] %s7602_s1 }
   0x3   :  { %7624 = sst [smem:[#allocation11_spill]] %s7603_s2 }
   0x4   :  { %24 = vsyncpa [#allocation3], 0  ;;  %s7625_s29 = sld [smem:[#allocation11_spill]]  ;;  %vm1285_vm0 = vcmask 130048  }
   0x5   :  { %s7626_s23 = sld [smem:[#allocation9_spill]] }
   0xa   :  { %v4969_v0 = vld [vmem:[%s7625_s29 + $0xe4] ss:$16 sps:$4 sm:$0xff]   ;;  %v4971_v1 = vld [vmem:[%s7625_s29 + $0xe0] ss:$16 sps:$4 sm:$0xff]  }
   0xb   :  { %1289 = vmatprep.subr.bf16.mxu0 %v4969_v0  ;;  %v4972_v2 = vld [vmem:[%s7625_s29 + $0x2e4] ss:$16 sps:$4 sm:$0xff]   ;;  %v4974_v3 = vld [vmem:[%s7625_s29 + $0x2e0] ss:$16 sps:$4 sm:$0xff]   ;;  %v60_v50 = vld [vmem:[%s7626_s23 + $0x8] sm:$0xff] }
   0xc   :  { %1290 = vmatpush1.bf16.msra.mxu0 %v4971_v1  ;;  %v4975_v4 = vld [vmem:[%s7625_s29 + $0xc4] ss:$16 sps:$4 sm:$0xff]   ;;  %v4977_v5 = vld [vmem:[%s7625_s29 + $0xc0] ss:$16 sps:$4 sm:$0xff]   ;;  %1330 = vmatprep.subr.bf16.mxu1 %v4972_v2  ;;  %v6048_v52 = vcombine.high %v60_v50, %v60_v50 }
   0xd   :  { %v4978_v6 = vld [vmem:[%s7625_s29 + $0x2c4] ss:$16 sps:$4 sm:$0xff]   ;;  %1331 = vmatpush1.bf16.msra.mxu1 %v4974_v3  ;;  %1291 = vmatprep.subr.bf16.mxu0 %v4975_v4  ;;  %v4980_v7 = vld [vmem:[%s7625_s29 + $0x2c0] ss:$16 sps:$4 sm:$0xff]  }
   0xe   :  { %1332 = vmatprep.subr.bf16.mxu1 %v4978_v6  ;;  %v4981_v8 = vld [vmem:[%s7625_s29 + $0xa4] ss:$16 sps:$4 sm:$0xff]   ;;  %v4983_v9 = vld [vmem:[%s7625_s29 + $0xa0] ss:$16 sps:$4 sm:$0xff]   ;;  %1362 = vmatprep.mubr.bf16.mxu1 %v6048_v52  ;;  %v5080_v6 = vld [vmem:[%s7625_s29 + $0xec] ss:$16 sps:$4 sm:$0xff]  }
   0xf   :  { %v4984_v10 = vld [vmem:[%s7625_s29 + $0x2a4] ss:$16 sps:$4 sm:$0xff]   ;;  %v4986_v12 = vld [vmem:[%s7625_s29 + $0x2a0] ss:$16 sps:$4 sm:$0xff]  }
  0x10   :  { %1292 = vmatpush1.bf16.msra.mxu0 %v4977_v5  ;;  %v4987_v11 = vld [vmem:[%s7625_s29 + $0x84] ss:$16 sps:$4 sm:$0xff]   ;;  %v4989_v14 = vld [vmem:[%s7625_s29 + $0x80] ss:$16 sps:$4 sm:$0xff]  }
  0x11   :  { %1293 = vmatprep.subr.bf16.mxu0 %v4981_v8  ;;  %1333 = vmatpush1.bf16.msra.mxu1 %v4980_v7  ;;  %v4990_v13 = vld [vmem:[%s7625_s29 + $0x284] ss:$16 sps:$4 sm:$0xff]   ;;  %v4992_v16 = vld [vmem:[%s7625_s29 + $0x280] ss:$16 sps:$4 sm:$0xff]   ;;  %v6107_v8 = vcombine.low %v60_v50, %v60_v50 }
  0x12   :  { %1334 = vmatprep.subr.bf16.mxu1 %v4984_v10  ;;  %v4993_v15 = vld [vmem:[%s7625_s29 + $0x64] ss:$16 sps:$4 sm:$0xff]   ;;  %v4995_v18 = vld [vmem:[%s7625_s29 + $0x60] ss:$16 sps:$4 sm:$0xff]   ;;  %v5078_v10 = vld [vmem:[%s7625_s29 + $0xe8] ss:$16 sps:$4 sm:$0xff]  }
  0x13   :  { %v4996_v17 = vld [vmem:[%s7625_s29 + $0x264] ss:$16 sps:$4 sm:$0xff]   ;;  %v4998_v20 = vld [vmem:[%s7625_s29 + $0x260] ss:$16 sps:$4 sm:$0xff]  }
  0x14   :  { %1294 = vmatpush1.bf16.msra.mxu0 %v4983_v9  ;;  %v4999_v19 = vld [vmem:[%s7625_s29 + $0x44] ss:$16 sps:$4 sm:$0xff]   ;;  %v5001_v22 = vld [vmem:[%s7625_s29 + $0x40] ss:$16 sps:$4 sm:$0xff]  }
  0x15   :  { %1295 = vmatprep.subr.bf16.mxu0 %v4987_v11  ;;  %1335 = vmatpush1.bf16.msra.mxu1 %v4986_v12  ;;  %v5002_v21 = vld [vmem:[%s7625_s29 + $0x244] ss:$16 sps:$4 sm:$0xff]   ;;  %v5004_v24 = vld [vmem:[%s7625_s29 + $0x240] ss:$16 sps:$4 sm:$0xff]   ;;  %v5086_v11 = vld [vmem:[%s7625_s29 + $0xcc] ss:$16 sps:$4 sm:$0xff]  }
  0x16   :  { %1336 = vmatprep.subr.bf16.mxu1 %v4990_v13  ;;  %v5005_v23 = vld [vmem:[%s7625_s29 + $0x24] ss:$16 sps:$4 sm:$0xff]   ;;  %v5007_v26 = vld [vmem:[%s7625_s29 + $0x20] ss:$16 sps:$4 sm:$0xff]  }
  0x17   :  { %v5008_v25 = vld [vmem:[%s7625_s29 + $0x224] ss:$16 sps:$4 sm:$0xff]   ;;  %v5010_v28 = vld [vmem:[%s7625_s29 + $0x220] ss:$16 sps:$4 sm:$0xff]  }
  0x18   :  { %1296 = vmatpush1.bf16.msra.mxu0 %v4989_v14  ;;  %v5011_v27 = vld [vmem:[%s7625_s29 + $0x4] ss:$16 sps:$4 sm:$0xff]   ;;  %v5013_v30 = vld [vmem:[%s7625_s29] ss:$16 sps:$4 sm:$0xff]   ;;  %v5084_v14 = vld [vmem:[%s7625_s29 + $0xc8] ss:$16 sps:$4 sm:$0xff]  }
  0x19   :  { %1297 = vmatprep.subr.bf16.mxu0 %v4993_v15  ;;  %1337 = vmatpush1.bf16.msra.mxu1 %v4992_v16  ;;  %v5014_v29 = vld [vmem:[%s7625_s29 + $0x204] ss:$16 sps:$4 sm:$0xff]   ;;  %v5016_v32 = vld [vmem:[%s7625_s29 + $0x200] ss:$16 sps:$4 sm:$0xff]   ;;  %v5092_v15 = vld [vmem:[%s7625_s29 + $0xac] ss:$16 sps:$4 sm:$0xff]  }
  0x1a   :  { %1338 = vmatprep.subr.bf16.mxu1 %v4996_v17  ;;  %v5017_v31 = vld [vmem:[%s7625_s29 + $0x1e4] ss:$16 sps:$4 sm:$0xff]   ;;  %v5019_v34 = vld [vmem:[%s7625_s29 + $0x1e0] ss:$16 sps:$4 sm:$0xff]  }
  0x1b   :  { %v5020_v33 = vld [vmem:[%s7625_s29 + $0x3e4] ss:$16 sps:$4 sm:$0xff]   ;;  %v5022_v36 = vld [vmem:[%s7625_s29 + $0x3e0] ss:$16 sps:$4 sm:$0xff]  }
  0x1c   :  { %1298 = vmatpush1.bf16.msra.mxu0 %v4995_v18  ;;  %v5023_v35 = vld [vmem:[%s7625_s29 + $0x1c4] ss:$16 sps:$4 sm:$0xff]   ;;  %v5025_v38 = vld [vmem:[%s7625_s29 + $0x1c0] ss:$16 sps:$4 sm:$0xff]   ;;  %v5090_v18 = vld [vmem:[%s7625_s29 + $0xa8] ss:$16 sps:$4 sm:$0xff]  }
  0x1d   :  { %1299 = vmatprep.subr.bf16.mxu0 %v4999_v19  ;;  %1339 = vmatpush1.bf16.msra.mxu1 %v4998_v20  ;;  %v5026_v37 = vld [vmem:[%s7625_s29 + $0x3c4] ss:$16 sps:$4 sm:$0xff]   ;;  %v5028_v40 = vld [vmem:[%s7625_s29 + $0x3c0] ss:$16 sps:$4 sm:$0xff]   ;;  %v5098_v19 = vld [vmem:[%s7625_s29 + $0x8c] ss:$16 sps:$4 sm:$0xff]  }
  0x1e   :  { %1340 = vmatprep.subr.bf16.mxu1 %v5002_v21  ;;  %v5029_v39 = vld [vmem:[%s7625_s29 + $0x1a4] ss:$16 sps:$4 sm:$0xff]   ;;  %v5031_v42 = vld [vmem:[%s7625_s29 + $0x1a0] ss:$16 sps:$4 sm:$0xff]  }
  0x1f   :  { %v5032_v41 = vld [vmem:[%s7625_s29 + $0x3a4] ss:$16 sps:$4 sm:$0xff]   ;;  %v5034_v44 = vld [vmem:[%s7625_s29 + $0x3a0] ss:$16 sps:$4 sm:$0xff]  }
  0x20   :  { %1300 = vmatpush1.bf16.msra.mxu0 %v5001_v22  ;;  %v5035_v43 = vld [vmem:[%s7625_s29 + $0x184] ss:$16 sps:$4 sm:$0xff]   ;;  %v5037_v47 = vld [vmem:[%s7625_s29 + $0x180] ss:$16 sps:$4 sm:$0xff]   ;;  %v5096_v22 = vld [vmem:[%s7625_s29 + $0x88] ss:$16 sps:$4 sm:$0xff]  }
  0x21   :  { %1301 = vmatprep.subr.bf16.mxu0 %v5005_v23  ;;  %1341 = vmatpush1.bf16.msra.mxu1 %v5004_v24  ;;  %v5038_v45 = vld [vmem:[%s7625_s29 + $0x384] ss:$16 sps:$4 sm:$0xff]   ;;  %v5040_v51 = vld [vmem:[%s7625_s29 + $0x380] ss:$16 sps:$4 sm:$0xff]   ;;  %v5104_v23 = vld [vmem:[%s7625_s29 + $0x6c] ss:$16 sps:$4 sm:$0xff]  }
  0x22   :  { %1342 = vmatprep.subr.bf16.mxu1 %v5008_v25  ;;  %v59_v46 = vld [vmem:[%s7626_s23] sm:$0xff] }
  0x23   :  { %v4410_v48 = vcombine.high %v59_v46, %v59_v46  ;;  %v5041_v49 = vld [vmem:[%s7625_s29 + $0x164] ss:$16 sps:$4 sm:$0xff]   ;;  %v5043_v54 = vld [vmem:[%s7625_s29 + $0x160] ss:$16 sps:$4 sm:$0xff]   ;;  %v6099_v5 = vcombine.low %v59_v46, %v59_v46 }
  0x24   :  { %1302 = vmatpush1.bf16.msra.mxu0 %v5007_v26  ;;  %v5044_v53 = vld [vmem:[%s7625_s29 + $0x364] ss:$16 sps:$4 sm:$0xff]   ;;  %v5046_v56 = vld [vmem:[%s7625_s29 + $0x360] ss:$16 sps:$4 sm:$0xff]   ;;  %v5102_v26 = vld [vmem:[%s7625_s29 + $0x68] ss:$16 sps:$4 sm:$0xff]  }
  0x25   :  { %1303 = vmatprep.subr.bf16.mxu0 %v5011_v27  ;;  %1343 = vmatpush1.bf16.msra.mxu1 %v5010_v28  ;;  %v5047_v55 = vld [vmem:[%s7625_s29 + $0x144] ss:$16 sps:$4 sm:$0xff]   ;;  %v5049_v58 = vld [vmem:[%s7625_s29 + $0x140] ss:$16 sps:$4 sm:$0xff]   ;;  %v5110_v27 = vld [vmem:[%s7625_s29 + $0x4c] ss:$16 sps:$4 sm:$0xff]  }
  0x26   :  { %1344 = vmatprep.subr.bf16.mxu1 %v5014_v29  ;;  %1321 = vmatprep.mubr.bf16.mxu0 %v4410_v48  ;;  %v5050_v57 = vld [vmem:[%s7625_s29 + $0x344] ss:$16 sps:$4 sm:$0xff]   ;;  %v5052_v60 = vld [vmem:[%s7625_s29 + $0x340] ss:$16 sps:$4 sm:$0xff]  }
  0x27   :  { %v5053_v59 = vld [vmem:[%s7625_s29 + $0x124] ss:$16 sps:$4 sm:$0xff]   ;;  %v5055_v62 = vld [vmem:[%s7625_s29 + $0x120] ss:$16 sps:$4 sm:$0xff]  }
  0x28   :  { %1304 = vmatpush1.bf16.msra.mxu0 %v5013_v30  ;;  %v5056_v61 = vld [vmem:[%s7625_s29 + $0x324] ss:$16 sps:$4 sm:$0xff]   ;;  %v5058_v0 = vld [vmem:[%s7625_s29 + $0x320] ss:$16 sps:$4 sm:$0xff]  }
  0x29   :  { %1305 = vmatprep.subr.bf16.mxu0 %v5017_v31  ;;  %1345 = vmatpush1.bf16.msra.mxu1 %v5016_v32  ;;  %v5059_v63 = vld [vmem:[%s7625_s29 + $0x104] ss:$16 sps:$4 sm:$0xff]   ;;  %v5061_v2 = vld [vmem:[%s7625_s29 + $0x100] ss:$16 sps:$4 sm:$0xff]   ;;  %v5108_v32 = vld [vmem:[%s7625_s29 + $0x48] ss:$16 sps:$4 sm:$0xff]  }
  0x2a   :  { %1346 = vmatprep.subr.bf16.mxu1 %v5020_v33  ;;  %v5062_v1 = vld [vmem:[%s7625_s29 + $0x304] ss:$16 sps:$4 sm:$0xff]   ;;  %v5066_v4 = vld [vmem:[%s7625_s29 + $0x300] ss:$16 sps:$4 sm:$0xff]   ;;  %v5116_v33 = vld [vmem:[%s7625_s29 + $0x2c] ss:$16 sps:$4 sm:$0xff]  }
  0x2b   :  { %v5069_v3 = vld [vmem:[%s7625_s29 + $0x4e4] ss:$16 sps:$4 sm:$0xff]   ;;  %v5067_v7 = vld [vmem:[%s7625_s29 + $0x4e0] ss:$16 sps:$4 sm:$0xff]  }
  0x2c   :  { %1306 = vmatpush2.bf16.msra.mxu0 %v5019_v34  ;;  %v5074_v9 = vld [vmem:[%s7625_s29 + $0x4c4] ss:$16 sps:$4 sm:$0xff]   ;;  %v5072_v12 = vld [vmem:[%s7625_s29 + $0x4c0] ss:$16 sps:$4 sm:$0xff]  }
  0x2d   :  { %1307 = vmatprep.subr.bf16.mxu0 %v5023_v35  ;;  %1347 = vmatpush2.bf16.msra.mxu1 %v5022_v36  ;;  %v5077_v13 = vld [vmem:[%s7625_s29 + $0x4a4] ss:$16 sps:$4 sm:$0xff]   ;;  %v5075_v16 = vld [vmem:[%s7625_s29 + $0x4a0] ss:$16 sps:$4 sm:$0xff]   ;;  %v5114_v36 = vld [vmem:[%s7625_s29 + $0x28] ss:$16 sps:$4 sm:$0xff]  }
  0x2e   :  { %1348 = vmatprep.subr.bf16.mxu1 %v5026_v37  ;;  %v5083_v17 = vld [vmem:[%s7625_s29 + $0x484] ss:$16 sps:$4 sm:$0xff]   ;;  %v5081_v20 = vld [vmem:[%s7625_s29 + $0x480] ss:$16 sps:$4 sm:$0xff]   ;;  %v5122_v37 = vld [vmem:[%s7625_s29 + $0xc] ss:$16 sps:$4 sm:$0xff]  }
  0x2f   :  { %v5089_v21 = vld [vmem:[%s7625_s29 + $0x464] ss:$16 sps:$4 sm:$0xff]   ;;  %v5087_v24 = vld [vmem:[%s7625_s29 + $0x460] ss:$16 sps:$4 sm:$0xff]  }
  0x30   :  { %1308 = vmatpush2.bf16.msra.mxu0 %v5025_v38  ;;  %v5095_v25 = vld [vmem:[%s7625_s29 + $0x444] ss:$16 sps:$4 sm:$0xff]   ;;  %v5093_v28 = vld [vmem:[%s7625_s29 + $0x440] ss:$16 sps:$4 sm:$0xff]  }
  0x31   :  { %1309 = vmatprep.subr.bf16.mxu0 %v5029_v39  ;;  %1349 = vmatpush2.bf16.msra.mxu1 %v5028_v40  ;;  %v6174_v29 = vld [vmem:[%s7626_s23 + $0x10] sm:$0xff]  ;;  %v5120_v40 = vld [vmem:[%s7625_s29 + $0x8] ss:$16 sps:$4 sm:$0xff]  }
  0x32   :  { %1350 = vmatprep.subr.bf16.mxu1 %v5032_v41  ;;  %v5101_v30 = vld [vmem:[%s7625_s29 + $0x424] ss:$16 sps:$4 sm:$0xff]   ;;  %v6181_v31 = vcombine.high %v6174_v29, %v6174_v29  ;;  %v5099_v34 = vld [vmem:[%s7625_s29 + $0x420] ss:$16 sps:$4 sm:$0xff]   ;;  %v5128_v41 = vld [vmem:[%s7625_s29 + $0x1ec] ss:$16 sps:$4 sm:$0xff]  }
  0x33   :  { %v5107_v35 = vld [vmem:[%s7625_s29 + $0x404] ss:$16 sps:$4 sm:$0xff]   ;;  %v5105_v38 = vld [vmem:[%s7625_s29 + $0x400] ss:$16 sps:$4 sm:$0xff]  }
  0x34   :  { %1310 = vmatpush2.bf16.msra.mxu0 %v5031_v42  ;;  %v5113_v39 = vld [vmem:[%s7625_s29 + $0x5e4] ss:$16 sps:$4 sm:$0xff]   ;;  %v5111_v42 = vld [vmem:[%s7625_s29 + $0x5e0] ss:$16 sps:$4 sm:$0xff]  }
  0x35   :  { %1311 = vmatprep.subr.bf16.mxu0 %v5035_v43  ;;  %1351 = vmatpush2.bf16.msra.mxu1 %v5034_v44  ;;  %v5119_v43 = vld [vmem:[%s7625_s29 + $0x5c4] ss:$16 sps:$4 sm:$0xff]   ;;  %v5126_v44 = vld [vmem:[%s7625_s29 + $0x1e8] ss:$16 sps:$4 sm:$0xff]   ;;  %v5117_v46 = vld [vmem:[%s7625_s29 + $0x5c0] ss:$16 sps:$4 sm:$0xff]  }
  0x36   :  { %1352 = vmatprep.subr.bf16.mxu1 %v5038_v45  ;;  %v5134_v45 = vld [vmem:[%s7625_s29 + $0x1cc] ss:$16 sps:$4 sm:$0xff]   ;;  %v5123_v50 = vld [vmem:[%s7625_s29 + $0x5a0] ss:$16 sps:$4 sm:$0xff]  }
  0x38   :  { %1312 = vmatpush2.bf16.msra.mxu0 %v5037_v47  ;;  %v5125_v47 = vld [vmem:[%s7625_s29 + $0x5a4] ss:$16 sps:$4 sm:$0xff]  }
  0x39   :  { %1313 = vmatprep.subr.bf16.mxu0 %v5041_v49  ;;  %1353 = vmatpush2.bf16.msra.mxu1 %v5040_v51  ;;  %v5140_v49 = vld [vmem:[%s7625_s29 + $0x1ac] ss:$16 sps:$4 sm:$0xff]   ;;  %v5131_v51 = vld [vmem:[%s7625_s29 + $0x584] ss:$16 sps:$4 sm:$0xff]  }
  0x3a   :  { %1354 = vmatprep.subr.bf16.mxu1 %v5044_v53  ;;  %v5138_v53 = vld [vmem:[%s7625_s29 + $0x1a8] ss:$16 sps:$4 sm:$0xff]  }
  0x3c   :  { %1314 = vmatpush2.bf16.msra.mxu0 %v5043_v54  ;;  %v5146_v54 = vld [vmem:[%s7625_s29 + $0x18c] ss:$16 sps:$4 sm:$0xff]  }
  0x3d   :  { %1315 = vmatprep.subr.bf16.mxu0 %v5047_v55  ;;  %1355 = vmatpush2.bf16.msra.mxu1 %v5046_v56  ;;  %v5129_v55 = vld [vmem:[%s7625_s29 + $0x580] ss:$16 sps:$4 sm:$0xff]   ;;  %v5137_v56 = vld [vmem:[%s7625_s29 + $0x564] ss:$16 sps:$4 sm:$0xff]  }
  0x3e   :  { %1356 = vmatprep.subr.bf16.mxu1 %v5050_v57  ;;  %v5144_v57 = vld [vmem:[%s7625_s29 + $0x188] ss:$16 sps:$4 sm:$0xff]  }
  0x40   :  { %1316 = vmatpush2.bf16.msra.mxu0 %v5049_v58  ;;  %v5152_v58 = vld [vmem:[%s7625_s29 + $0x16c] ss:$16 sps:$4 sm:$0xff]  }
  0x41   :  { %1317 = vmatprep.subr.bf16.mxu0 %v5053_v59  ;;  %1357 = vmatpush2.bf16.msra.mxu1 %v5052_v60  ;;  %v5135_v59 = vld [vmem:[%s7625_s29 + $0x560] ss:$16 sps:$4 sm:$0xff]   ;;  %v5143_v60 = vld [vmem:[%s7625_s29 + $0x544] ss:$16 sps:$4 sm:$0xff]  }
  0x42   :  { %1358 = vmatprep.subr.bf16.mxu1 %v5056_v61  ;;  %v5150_v61 = vld [vmem:[%s7625_s29 + $0x168] ss:$16 sps:$4 sm:$0xff]  }
  0x44   :  { %1318 = vmatpush2.bf16.msra.mxu0 %v5055_v62  ;;  %v5158_v62 = vld [vmem:[%s7625_s29 + $0x14c] ss:$16 sps:$4 sm:$0xff]  }
  0x45   :  { %1319 = vmatprep.subr.bf16.mxu0 %v5059_v63  ;;  %1359 = vmatpush2.bf16.msra.mxu1 %v5058_v0  ;;  %v5141_v63 = vld [vmem:[%s7625_s29 + $0x540] ss:$16 sps:$4 sm:$0xff]   ;;  %v5149_v0 = vld [vmem:[%s7625_s29 + $0x524] ss:$16 sps:$4 sm:$0xff]  }
  0x46   :  { %1360 = vmatprep.subr.bf16.mxu1 %v5062_v1  ;;  %v5156_v1 = vld [vmem:[%s7625_s29 + $0x148] ss:$16 sps:$4 sm:$0xff]  }
  0x48   :  { %1320 = vmatpush2.bf16.msra.mxu0 %v5061_v2  ;;  %v5166_v2 = vld [vmem:[%s7625_s29 + $0x12c] ss:$16 sps:$4 sm:$0xff]  }
  0x49   :  { %1371 = vmatprep.subr.bf16.mxu0 %v5069_v3  ;;  %1361 = vmatpush2.bf16.msra.mxu1 %v5066_v4  ;;  %v5147_v3 = vld [vmem:[%s7625_s29 + $0x520] ss:$16 sps:$4 sm:$0xff]   ;;  %v5155_v4 = vld [vmem:[%s7625_s29 + $0x504] ss:$16 sps:$4 sm:$0xff]  }
  0x4a   :  { %1453 = vmatprep.subr.bf16.mxu1 %v5080_v6  ;;  %v5164_v6 = vld [vmem:[%s7625_s29 + $0x128] ss:$16 sps:$4 sm:$0xff]  }
  0x4b   :  { %1322 = vmatmul.mubr.bf16.vlgmr.msra.gmra.mxu0 %v6099_v5 }
  0x4c   :  { %1372 = vmatpush1.bf16.msra.mxu0 %v5067_v7  ;;  %1363 = vmatmul.mubr.bf16.vlgmr.msra.gmra.mxu1 %v6107_v8  ;;  %v5169_v7 = vld [vmem:[%s7625_s29 + $0x10c] ss:$16 sps:$4 sm:$0xff]  }
  0x4d   :  { %1373 = vmatprep.subr.bf16.mxu0 %v5074_v9  ;;  %1454 = vmatpush1.bf16.msra.mxu1 %v5078_v10  ;;  %v5153_v9 = vld [vmem:[%s7625_s29 + $0x500] ss:$16 sps:$4 sm:$0xff]   ;;  %v5163_v10 = vld [vmem:[%s7625_s29 + $0x604] ss:$16 sps:$4 sm:$0xff]  }
  0x4e   :  { %1485 = vmatprep.mubr.bf16.mxu1 %v4410_v48  ;;  %1455 = vmatprep.subr.bf16.mxu1 %v5086_v11  ;;  %v5132_v48 = vld [vmem:[%s7625_s29 + $0x1c8] ss:$16 sps:$4 sm:$0xff]  }
  0x4f   :  { %1403 = vmatprep.mubr.bf16.mxu0 %v6181_v31  ;;  %v5167_v11 = vld [vmem:[%s7625_s29 + $0x108] ss:$16 sps:$4 sm:$0xff]  }
  0x50   :  { %1374 = vmatpush1.bf16.msra.mxu0 %v5072_v12  ;;  %v6309_v12 = vcombine.low %v6174_v29, %v6174_v29  ;;  %v5191_v29 = vld [vmem:[%s7625_s29 + $0x28c] ss:$16 sps:$4 sm:$0xff]  }
  0x51   :  { %1375 = vmatprep.subr.bf16.mxu0 %v5077_v13  ;;  %1456 = vmatpush1.bf16.msra.mxu1 %v5084_v14  ;;  %v5176_v13 = vld [vmem:[%s7625_s29 + $0x4ec] ss:$16 sps:$4 sm:$0xff]   ;;  %v5161_v14 = vld [vmem:[%s7625_s29 + $0x600] ss:$16 sps:$4 sm:$0xff]  }
  0x52   :  { %1457 = vmatprep.subr.bf16.mxu1 %v5092_v15  ;;  %v5172_v15 = vld [vmem:[%s7625_s29 + $0x2ec] ss:$16 sps:$4 sm:$0xff]  }
  0x54   :  { %1376 = vmatpush1.bf16.msra.mxu0 %v5075_v16  ;;  %v5174_v16 = vld [vmem:[%s7625_s29 + $0x4e8] ss:$16 sps:$4 sm:$0xff]  }
  0x55   :  { %1377 = vmatprep.subr.bf16.mxu0 %v5083_v17  ;;  %1458 = vmatpush1.bf16.msra.mxu1 %v5090_v18  ;;  %v5182_v17 = vld [vmem:[%s7625_s29 + $0x4cc] ss:$16 sps:$4 sm:$0xff]   ;;  %v5796_v18 = vmov 0  }
  0x56   :  { %1459 = vmatprep.subr.bf16.mxu1 %v5098_v19  ;;  %v6331_v19 = vld [vmem:[%s7626_s23 + $0x18] ss:$0 sps:$4 sm:$0xff]  }
  0x58   :  { %1378 = vmatpush1.bf16.msra.mxu0 %v5081_v20  ;;  %v5180_v20 = vld [vmem:[%s7625_s29 + $0x4c8] ss:$16 sps:$4 sm:$0xff]  }
  0x59   :  { %1379 = vmatprep.subr.bf16.mxu0 %v5089_v21  ;;  %1460 = vmatpush1.bf16.msra.mxu1 %v5096_v22  ;;  %v5188_v21 = vld [vmem:[%s7625_s29 + $0x4ac] ss:$16 sps:$4 sm:$0xff]   ;;  %v5170_v22 = vld [vmem:[%s7625_s29 + $0x2e8] ss:$16 sps:$4 sm:$0xff]  }
  0x5a   :  { %1461 = vmatprep.subr.bf16.mxu1 %v5104_v23  ;;  %v5179_v23 = vld [vmem:[%s7625_s29 + $0x2cc] ss:$16 sps:$4 sm:$0xff]  }
  0x5c   :  { %1380 = vmatpush1.bf16.msra.mxu0 %v5087_v24  ;;  %v5194_v24 = vld [vmem:[%s7625_s29 + $0x48c] ss:$16 sps:$4 sm:$0xff]  }
  0x5d   :  { %1381 = vmatprep.subr.bf16.mxu0 %v5095_v25  ;;  %1462 = vmatpush1.bf16.msra.mxu1 %v5102_v26  ;;  %v5177_v25 = vld [vmem:[%s7625_s29 + $0x2c8] ss:$16 sps:$4 sm:$0xff]   ;;  %v5185_v26 = vld [vmem:[%s7625_s29 + $0x2ac] ss:$16 sps:$4 sm:$0xff]  }
  0x5e   :  { %1463 = vmatprep.subr.bf16.mxu1 %v5110_v27  ;;  %v5192_v27 = vld [vmem:[%s7625_s29 + $0x488] ss:$16 sps:$4 sm:$0xff]  }
  0x60   :  { %1382 = vmatpush1.bf16.msra.mxu0 %v5093_v28  ;;  %v5200_v28 = vld [vmem:[%s7625_s29 + $0x46c] ss:$16 sps:$4 sm:$0xff]  }
  0x61   :  { %1383 = vmatprep.subr.bf16.mxu0 %v5101_v30  ;;  %1464 = vmatpush1.bf16.msra.mxu1 %v5108_v32  ;;  %v5189_v30 = vld [vmem:[%s7625_s29 + $0x288] ss:$16 sps:$4 sm:$0xff]   ;;  %v5206_v32 = vld [vmem:[%s7625_s29 + $0x44c] ss:$16 sps:$4 sm:$0xff]  }
  0x62   :  { %1465 = vmatprep.subr.bf16.mxu1 %v5116_v33  ;;  %v5197_v33 = vld [vmem:[%s7625_s29 + $0x26c] ss:$16 sps:$4 sm:$0xff]  }
  0x64   :  { %1384 = vmatpush1.bf16.msra.mxu0 %v5099_v34  ;;  %v5204_v34 = vld [vmem:[%s7625_s29 + $0x448] ss:$16 sps:$4 sm:$0xff]  }
  0x65   :  { %1385 = vmatprep.subr.bf16.mxu0 %v5107_v35  ;;  %1466 = vmatpush1.bf16.msra.mxu1 %v5114_v36  ;;  %v5212_v35 = vld [vmem:[%s7625_s29 + $0x42c] ss:$16 sps:$4 sm:$0xff]   ;;  %v5195_v36 = vld [vmem:[%s7625_s29 + $0x268] ss:$16 sps:$4 sm:$0xff]  }
  0x66   :  { %1467 = vmatprep.subr.bf16.mxu1 %v5122_v37  ;;  %v5203_v37 = vld [vmem:[%s7625_s29 + $0x24c] ss:$16 sps:$4 sm:$0xff]  }
  0x68   :  { %1386 = vmatpush1.bf16.msra.mxu0 %v5105_v38  ;;  %v5210_v38 = vld [vmem:[%s7625_s29 + $0x428] ss:$16 sps:$4 sm:$0xff]  }
  0x69   :  { %1387 = vmatprep.subr.bf16.mxu0 %v5113_v39  ;;  %1468 = vmatpush1.bf16.msra.mxu1 %v5120_v40  ;;  %v5218_v39 = vld [vmem:[%s7625_s29 + $0x40c] ss:$16 sps:$4 sm:$0xff]   ;;  %v5201_v40 = vld [vmem:[%s7625_s29 + $0x248] ss:$16 sps:$4 sm:$0xff]  }
  0x6a   :  { %1469 = vmatprep.subr.bf16.mxu1 %v5128_v41  ;;  %v5209_v41 = vld [vmem:[%s7625_s29 + $0x22c] ss:$16 sps:$4 sm:$0xff]  }
  0x6c   :  { %1388 = vmatpush2.bf16.msra.mxu0 %v5111_v42  ;;  %v5216_v42 = vld [vmem:[%s7625_s29 + $0x408] ss:$16 sps:$4 sm:$0xff]  }
  0x6d   :  { %1389 = vmatprep.subr.bf16.mxu0 %v5119_v43  ;;  %1470 = vmatpush2.bf16.msra.mxu1 %v5126_v44  ;;  %v5224_v43 = vld [vmem:[%s7625_s29 + $0x5ec] ss:$16 sps:$4 sm:$0xff]   ;;  %v5207_v44 = vld [vmem:[%s7625_s29 + $0x228] ss:$16 sps:$4 sm:$0xff]  }
  0x6e   :  { %1471 = vmatprep.subr.bf16.mxu1 %v5134_v45  ;;  %v5215_v45 = vld [vmem:[%s7625_s29 + $0x20c] ss:$16 sps:$4 sm:$0xff]  }
  0x70   :  { %1390 = vmatpush2.bf16.msra.mxu0 %v5117_v46  ;;  %v5222_v46 = vld [vmem:[%s7625_s29 + $0x5e8] ss:$16 sps:$4 sm:$0xff]  }
  0x71   :  { %1391 = vmatprep.subr.bf16.mxu0 %v5125_v47  ;;  %1472 = vmatpush2.bf16.msra.mxu1 %v5132_v48  ;;  %v5230_v47 = vld [vmem:[%s7625_s29 + $0x5cc] ss:$16 sps:$4 sm:$0xff]   ;;  %v5213_v48 = vld [vmem:[%s7625_s29 + $0x208] ss:$16 sps:$4 sm:$0xff]  }
  0x72   :  { %1473 = vmatprep.subr.bf16.mxu1 %v5140_v49  ;;  %v5221_v49 = vld [vmem:[%s7625_s29 + $0x3ec] ss:$16 sps:$4 sm:$0xff]  }
  0x74   :  { %1392 = vmatpush2.bf16.msra.mxu0 %v5123_v50  ;;  %v5228_v50 = vld [vmem:[%s7625_s29 + $0x5c8] ss:$16 sps:$4 sm:$0xff]  }
  0x75   :  { %1393 = vmatprep.subr.bf16.mxu0 %v5131_v51  ;;  %1474 = vmatpush2.bf16.msra.mxu1 %v5138_v53  ;;  %v5236_v51 = vld [vmem:[%s7625_s29 + $0x5ac] ss:$16 sps:$4 sm:$0xff]   ;;  %v5219_v53 = vld [vmem:[%s7625_s29 + $0x3e8] ss:$16 sps:$4 sm:$0xff]  }
  0x76   :  { %1475 = vmatprep.subr.bf16.mxu1 %v5146_v54  ;;  %v5227_v54 = vld [vmem:[%s7625_s29 + $0x3cc] ss:$16 sps:$4 sm:$0xff]  }
  0x78   :  { %1394 = vmatpush2.bf16.msra.mxu0 %v5129_v55  ;;  %v5234_v55 = vld [vmem:[%s7625_s29 + $0x5a8] ss:$16 sps:$4 sm:$0xff]  }
  0x79   :  { %1395 = vmatprep.subr.bf16.mxu0 %v5137_v56  ;;  %1476 = vmatpush2.bf16.msra.mxu1 %v5144_v57  ;;  %v5242_v56 = vld [vmem:[%s7625_s29 + $0x58c] ss:$16 sps:$4 sm:$0xff]   ;;  %v5225_v57 = vld [vmem:[%s7625_s29 + $0x3c8] ss:$16 sps:$4 sm:$0xff]  }
  0x7a   :  { %1477 = vmatprep.subr.bf16.mxu1 %v5152_v58  ;;  %v5233_v58 = vld [vmem:[%s7625_s29 + $0x3ac] ss:$16 sps:$4 sm:$0xff]  }
  0x7c   :  { %1396 = vmatpush2.bf16.msra.mxu0 %v5135_v59  ;;  %v5240_v59 = vld [vmem:[%s7625_s29 + $0x588] ss:$16 sps:$4 sm:$0xff]  }
  0x7d   :  { %1397 = vmatprep.subr.bf16.mxu0 %v5143_v60  ;;  %1478 = vmatpush2.bf16.msra.mxu1 %v5150_v61  ;;  %v5248_v60 = vld [vmem:[%s7625_s29 + $0x56c] ss:$16 sps:$4 sm:$0xff]   ;;  %v5231_v61 = vld [vmem:[%s7625_s29 + $0x3a8] ss:$16 sps:$4 sm:$0xff]  }
  0x7e   :  { %1479 = vmatprep.subr.bf16.mxu1 %v5158_v62  ;;  %v5239_v62 = vld [vmem:[%s7625_s29 + $0x38c] ss:$16 sps:$4 sm:$0xff]  }
  0x80   :  { %1398 = vmatpush2.bf16.msra.mxu0 %v5141_v63  ;;  %v5246_v63 = vld [vmem:[%s7625_s29 + $0x568] ss:$16 sps:$4 sm:$0xff]  }
  0x81   :  { %1399 = vmatprep.subr.bf16.mxu0 %v5149_v0  ;;  %1480 = vmatpush2.bf16.msra.mxu1 %v5156_v1  ;;  %v5254_v0 = vld [vmem:[%s7625_s29 + $0x54c] ss:$16 sps:$4 sm:$0xff]   ;;  %v5237_v1 = vld [vmem:[%s7625_s29 + $0x388] ss:$16 sps:$4 sm:$0xff]  }
  0x82   :  { %1481 = vmatprep.subr.bf16.mxu1 %v5166_v2  ;;  %v5245_v2 = vld [vmem:[%s7625_s29 + $0x36c] ss:$16 sps:$4 sm:$0xff]  }
  0x84   :  { %1400 = vmatpush2.bf16.msra.mxu0 %v5147_v3  ;;  %v5252_v3 = vld [vmem:[%s7625_s29 + $0x548] ss:$16 sps:$4 sm:$0xff]  }
  0x85   :  { %1401 = vmatprep.subr.bf16.mxu0 %v5155_v4  ;;  %1482 = vmatpush2.bf16.msra.mxu1 %v5164_v6  ;;  %v5260_v4 = vld [vmem:[%s7625_s29 + $0x52c] ss:$16 sps:$4 sm:$0xff]   ;;  %v5243_v6 = vld [vmem:[%s7625_s29 + $0x368] ss:$16 sps:$4 sm:$0xff]  }
  0x86   :  { %1483 = vmatprep.subr.bf16.mxu1 %v5169_v7  ;;  %v5251_v7 = vld [vmem:[%s7625_s29 + $0x34c] ss:$16 sps:$4 sm:$0xff]  }
  0x88   :  { %1402 = vmatpush2.bf16.msra.mxu0 %v5153_v9  ;;  %v5258_v9 = vld [vmem:[%s7625_s29 + $0x528] ss:$16 sps:$4 sm:$0xff]  }
  0x89   :  { %1426 = vmatprep.subr.bf16.mxu0 %v5163_v10  ;;  %1484 = vmatpush2.bf16.msra.mxu1 %v5167_v11  ;;  %v5266_v10 = vld [vmem:[%s7625_s29 + $0x50c] ss:$16 sps:$4 sm:$0xff]   ;;  %v5249_v11 = vld [vmem:[%s7625_s29 + $0x348] ss:$16 sps:$4 sm:$0xff]  }
  0x8a   :  { %1535 = vmatprep.subr.bf16.mxu1 %v5176_v13  ;;  %v5257_v13 = vld [vmem:[%s7625_s29 + $0x32c] ss:$16 sps:$4 sm:$0xff]  }
  0x8b   :  { %1404 = vmatmul.mubr.bf16.vlgmr.msra.gmra.mxu0 %v6309_v12 }
  0x8c   :  { %1427 = vmatpush1.bf16.msra.mxu0 %v5161_v14  ;;  %1444 = vmatprep.mubr.bf16.mxu0 %v5796_v18  ;;  %v5264_v14 = vld [vmem:[%s7625_s29 + $0x508] ss:$16 sps:$4 sm:$0xff]  }
  0x8d   :  { %1494 = vmatprep.subr.bf16.mxu0 %v5172_v15  ;;  %1486 = vmatmul.mubr.bf16.vlgmr.msra.gmra.mxu1 %v6099_v5  ;;  %v5186_v5 = vld [vmem:[%s7625_s29 + $0x4a8] ss:$16 sps:$4 sm:$0xff]  }
  0x8e   :  { %1536 = vmatpush1.bf16.msra.mxu1 %v5174_v16  ;;  %1567 = vmatprep.mubr.bf16.mxu1 %v6181_v31  ;;  %v5198_v31 = vld [vmem:[%s7625_s29 + $0x468] ss:$16 sps:$4 sm:$0xff]   ;;  %v5263_v16 = vld [vmem:[%s7625_s29 + $0x30c] ss:$16 sps:$4 sm:$0xff]  }
  0x8f   :  { %1537 = vmatprep.subr.bf16.mxu1 %v5182_v17  ;;  %v5255_v15 = vld [vmem:[%s7625_s29 + $0x328] ss:$16 sps:$4 sm:$0xff]  }
  0x90   :  { %v5261_v17 = vld [vmem:[%s7625_s29 + $0x308] ss:$16 sps:$4 sm:$0xff]  }
  0x92   :  { %1538 = vmatpush1.bf16.msra.mxu1 %v5180_v20  ;;  %v5269_v20 = vld [vmem:[%s7625_s29 + $0x60c] ss:$16 sps:$4 sm:$0xff]  }
  0x93   :  { %4612 = vmatmul.mubr.msk.bf16.vlgmr.msra.gmra.mxu0 %vm1285_vm0, %v6331_v19  ;;  %1539 = vmatprep.subr.bf16.mxu1 %v5188_v21  ;;  %v5267_v21 = vld [vmem:[%s7625_s29 + $0x608] ss:$16 sps:$4 sm:$0xff]  }
  0x94   :  { %1495 = vmatpush1.bf16.msra.mxu0 %v5170_v22  ;;  %1526 = vmatprep.mubr.bf16.mxu0 %v6048_v52  ;;  %v5183_v52 = vld [vmem:[%s7625_s29 + $0x2a8] ss:$16 sps:$4 sm:$0xff]   ;;  %v5272_v22 = vld [vmem:[%s7605_s4 + $0x74] ss:$8 sps:$4 sm:$0xff]  }
  0x95   :  { %1496 = vmatprep.subr.bf16.mxu0 %v5179_v23  ;;  %v5275_v23 = vld [vmem:[%s7605_s4 + $0x64] ss:$8 sps:$4 sm:$0xff]  }
  0x96   :  { %1540 = vmatpush1.bf16.msra.mxu1 %v5186_v5  ;;  %v5273_v5 = vld [vmem:[%s7605_s4 + $0x60] ss:$8 sps:$4 sm:$0xff]  }
  0x97   :  { %1541 = vmatprep.subr.bf16.mxu1 %v5194_v24  ;;  %v5318_v24 = vld [vmem:[%s7605_s4 + $0x170] ss:$8 sps:$4 sm:$0xff]  }
  0x98   :  { %1497 = vmatpush1.bf16.msra.mxu0 %v5177_v25  ;;  %v5320_v25 = vld [vmem:[%s7605_s4 + $0x174] ss:$8 sps:$4 sm:$0xff]  }
  0x99   :  { %1498 = vmatprep.subr.bf16.mxu0 %v5185_v26  ;;  %v5323_v26 = vld [vmem:[%s7605_s4 + $0x164] ss:$8 sps:$4 sm:$0xff]  }
  0x9a   :  { %1542 = vmatpush1.bf16.msra.mxu1 %v5192_v27  ;;  %v5281_v27 = vld [vmem:[%s7605_s4 + $0x44] ss:$8 sps:$4 sm:$0xff]  }
  0x9b   :  { %1543 = vmatprep.subr.bf16.mxu1 %v5200_v28  ;;  %v5321_v28 = vld [vmem:[%s7605_s4 + $0x160] ss:$8 sps:$4 sm:$0xff]  }
  0x9c   :  { %1499 = vmatpush1.bf16.msra.mxu0 %v5183_v52  ;;  %v5326_v52 = vld [vmem:[%s7605_s4 + $0x154] ss:$8 sps:$4 sm:$0xff]  }
  0x9d   :  { %1500 = vmatprep.subr.bf16.mxu0 %v5191_v29  ;;  %v5279_v29 = vld [vmem:[%s7605_s4 + $0x40] ss:$8 sps:$4 sm:$0xff]  }
  0x9e   :  { %1544 = vmatpush1.bf16.msra.mxu1 %v5198_v31  ;;  %v5284_v31 = vld [vmem:[%s7605_s4 + $0x34] ss:$8 sps:$4 sm:$0xff]  }
  0x9f   :  { %1545 = vmatprep.subr.bf16.mxu1 %v5206_v32  ;;  %v5329_v32 = vld [vmem:[%s7605_s4 + $0x144] ss:$8 sps:$4 sm:$0xff]  }
  0xa0   :  { %1501 = vmatpush1.bf16.msra.mxu0 %v5189_v30  ;;  %v5324_v30 = vld [vmem:[%s7605_s4 + $0x150] ss:$8 sps:$4 sm:$0xff]  }
  0xa1   :  { %1502 = vmatprep.subr.bf16.mxu0 %v5197_v33  ;;  %v5282_v33 = vld [vmem:[%s7605_s4 + $0x30] ss:$8 sps:$4 sm:$0xff]  }
  0xa2   :  { %1546 = vmatpush1.bf16.msra.mxu1 %v5204_v34  ;;  %v5327_v34 = vld [vmem:[%s7605_s4 + $0x140] ss:$8 sps:$4 sm:$0xff]  }
  0xa3   :  { %1547 = vmatprep.subr.bf16.mxu1 %v5212_v35  ;;  %v5287_v35 = vld [vmem:[%s7605_s4 + $0x24] ss:$8 sps:$4 sm:$0xff]  }
  0xa4   :  { %1503 = vmatpush1.bf16.msra.mxu0 %v5195_v36  ;;  %v5332_v36 = vld [vmem:[%s7605_s4 + $0x134] ss:$8 sps:$4 sm:$0xff]  }
  0xa5   :  { %1504 = vmatprep.subr.bf16.mxu0 %v5203_v37  ;;  %v5285_v37 = vld [vmem:[%s7605_s4 + $0x20] ss:$8 sps:$4 sm:$0xff]  }
  0xa6   :  { %1548 = vmatpush1.bf16.msra.mxu1 %v5210_v38  ;;  %v5330_v38 = vld [vmem:[%s7605_s4 + $0x130] ss:$8 sps:$4 sm:$0xff]  }
  0xa7   :  { %1549 = vmatprep.subr.bf16.mxu1 %v5218_v39  ;;  %v5290_v39 = vld [vmem:[%s7605_s4 + $0x14] ss:$8 sps:$4 sm:$0xff]  }
  0xa8   :  { %1505 = vmatpush1.bf16.msra.mxu0 %v5201_v40  ;;  %v5288_v40 = vld [vmem:[%s7605_s4 + $0x10] ss:$8 sps:$4 sm:$0xff]  }
  0xa9   :  { %1506 = vmatprep.subr.bf16.mxu0 %v5209_v41  ;;  %v5293_v41 = vld [vmem:[%s7605_s4 + $0x4] ss:$8 sps:$4 sm:$0xff]  }
  0xaa   :  { %1550 = vmatpush1.bf16.msra.mxu1 %v5216_v42  ;;  %v5291_v42 = vld [vmem:[%s7605_s4] ss:$8 sps:$4 sm:$0xff]  }
  0xab   :  { %1551 = vmatprep.subr.bf16.mxu1 %v5224_v43  ;;  %v5296_v43 = vld [vmem:[%s7605_s4 + $0xf4] ss:$8 sps:$4 sm:$0xff]  }
  0xac   :  { %1507 = vmatpush1.bf16.msra.mxu0 %v5207_v44  ;;  %v5294_v44 = vld [vmem:[%s7605_s4 + $0xf0] ss:$8 sps:$4 sm:$0xff]  }
  0xad   :  { %1508 = vmatprep.subr.bf16.mxu0 %v5215_v45  ;;  %v261_v45 = vlaneseq }
  0xae   :  { %1552 = vmatpush2.bf16.msra.mxu1 %v5222_v46  ;;  %v5299_v46 = vld [vmem:[%s7605_s4 + $0xe4] ss:$8 sps:$4 sm:$0xff]  }
  0xaf   :  { %1553 = vmatprep.subr.bf16.mxu1 %v5230_v47  ;;  %v5297_v47 = vld [vmem:[%s7605_s4 + $0xe0] ss:$8 sps:$4 sm:$0xff]  }
  0xb0   :  { %1509 = vmatpush1.bf16.msra.mxu0 %v5213_v48  ;;  %v6619_v48 = vshrl.u32 %v261_v45, 7 }
  0xb1   :  { %1510 = vmatprep.subr.bf16.mxu0 %v5221_v49  ;;  %v5302_v49 = vld [vmem:[%s7605_s4 + $0xd4] ss:$8 sps:$4 sm:$0xff]  }
  0xb2   :  { %1554 = vmatpush2.bf16.msra.mxu1 %v5228_v50  ;;  %v5300_v50 = vld [vmem:[%s7605_s4 + $0xd0] ss:$8 sps:$4 sm:$0xff]  }
  0xb3   :  { %1555 = vmatprep.subr.bf16.mxu1 %v5236_v51  ;;  %v6628_v51 = vsub.s32 0, %v6619_v48 }
  0xb4   :  { %1511 = vmatpush2.bf16.msra.mxu0 %v5219_v53  ;;  %v6631_v53 = vsub.s32 1, %v6619_v48 }
  0xb5   :  { %1512 = vmatprep.subr.bf16.mxu0 %v5227_v54  ;;  %v5305_v54 = vld [vmem:[%s7605_s4 + $0xc4] ss:$8 sps:$4 sm:$0xff]  }
  0xb6   :  { %1556 = vmatpush2.bf16.msra.mxu1 %v5234_v55  ;;  %v5303_v55 = vld [vmem:[%s7605_s4 + $0xc0] ss:$8 sps:$4 sm:$0xff]  }
  0xb7   :  { %1557 = vmatprep.subr.bf16.mxu1 %v5242_v56  ;;  %v6642_v56 = vld [vmem:[%s7604_s3] sm:$0xf] }
  0xb8   :  { %1513 = vmatpush2.bf16.msra.mxu0 %v5225_v57  ;;  %v5308_v57 = vld [vmem:[%s7605_s4 + $0xb4] ss:$8 sps:$4 sm:$0xff]  }
  0xb9   :  { %1514 = vmatprep.subr.bf16.mxu0 %v5233_v58  ;;  %v5306_v58 = vld [vmem:[%s7605_s4 + $0xb0] ss:$8 sps:$4 sm:$0xff]  }
  0xba   :  { %1558 = vmatpush2.bf16.msra.mxu1 %v5240_v59  ;;  %v5311_v59 = vld [vmem:[%s7605_s4 + $0xa4] ss:$8 sps:$4 sm:$0xff]  }
  0xbb   :  { %1559 = vmatprep.subr.bf16.mxu1 %v5248_v60  ;;  %v264_v60 = vrot.slane %v6642_v56, %v6628_v51 }
  0xbc   :  { %1515 = vmatpush2.bf16.msra.mxu0 %v5231_v61  ;;  %v268_v61 = vrot.slane %v6642_v56, %v6631_v53 }
  0xbd   :  { %1516 = vmatprep.subr.bf16.mxu0 %v5239_v62  ;;  %v5309_v62 = vld [vmem:[%s7605_s4 + $0xa0] ss:$8 sps:$4 sm:$0xff]  }
  0xbe   :  { %1560 = vmatpush2.bf16.msra.mxu1 %v5246_v63 }
  0xbf   :  { %1561 = vmatprep.subr.bf16.mxu1 %v5254_v0  ;;  %v5314_v0 = vld [vmem:[%s7605_s4 + $0x94] ss:$8 sps:$4 sm:$0xff]  }
  0xc0   :  { %1517 = vmatpush2.bf16.msra.mxu0 %v5237_v1 }
  0xc1   :  { %1518 = vmatprep.subr.bf16.mxu0 %v5245_v2 }
  0xc2   :  { %1562 = vmatpush2.bf16.msra.mxu1 %v5252_v3 }
  0xc3   :  { %1563 = vmatprep.subr.bf16.mxu1 %v5260_v4 }
  0xc4   :  { %1519 = vmatpush2.bf16.msra.mxu0 %v5243_v6 }
  0xc5   :  { %1520 = vmatprep.subr.bf16.mxu0 %v5251_v7 }
  0xc6   :  { %1564 = vmatpush2.bf16.msra.mxu1 %v5258_v9 }
  0xc7   :  { %1565 = vmatprep.subr.bf16.mxu1 %v5266_v10 }
  0xc8   :  { %1521 = vmatpush2.bf16.msra.mxu0 %v5249_v11  ;;  %v5312_v11 = vld [vmem:[%s7605_s4 + $0x90] ss:$8 sps:$4 sm:$0xff]  }
  0xc9   :  { %1522 = vmatprep.subr.bf16.mxu0 %v5257_v13 }
  0xca   :  { %1566 = vmatpush2.bf16.msra.mxu1 %v5264_v14 }
  0xcb   :  { %1981 = vmatprep.subr.bf16.mxu1 %v5320_v25 }
  0xcc   :  { %1523 = vmatpush2.bf16.msra.mxu0 %v5255_v15 }
  0xcd   :  { %1524 = vmatprep.subr.bf16.mxu0 %v5263_v16  ;;  %1568 = vmatmul.mubr.bf16.vlgmr.msra.gmra.mxu1 %v6309_v12  ;;  %v5270_v12 = vld [vmem:[%s7605_s4 + $0x70] ss:$8 sps:$4 sm:$0xff]  }
  0xce   :  { %1982 = vmatpush1.bf16.msra.mxu1 %v5318_v24 }
  0xcf   :  { %1983 = vmatprep.subr.bf16.mxu1 %v5323_v26 }
  0xd0   :  { %1525 = vmatpush2.bf16.msra.mxu0 %v5261_v17 }
  0xd1   :  { %1590 = vmatprep.subr.bf16.mxu0 %v5269_v20 }
  0xd2   :  { %1984 = vmatpush1.bf16.msra.mxu1 %v5321_v28 }
  0xd3   :  { %1527 = vmatmul.mubr.bf16.vlgmr.msra.gmra.mxu0 %v6107_v8  ;;  %v5278_v8 = vld [vmem:[%s7605_s4 + $0x54] ss:$8 sps:$4 sm:$0xff]   ;;  %1985 = vmatprep.subr.bf16.mxu1 %v5326_v52 }
  0xd4   :  { %1591 = vmatpush1.bf16.msra.mxu0 %v5267_v21  ;;  %1608 = vmatprep.mubr.bf16.mxu0 %v5796_v18 }
  0xd5   :  { %1940 = vmatprep.subr.bf16.mxu0 %v5272_v22 }
  0xd6   :  { %1986 = vmatpush1.bf16.msra.mxu1 %v5324_v30 }
  0xd7   :  { %1987 = vmatprep.subr.bf16.mxu1 %v5329_v32 }
  0xda   :  { %1988 = vmatpush1.bf16.msra.mxu1 %v5327_v34 }
  0xdb   :  { %4613 = vmatmul.mubr.msk.bf16.vlgmr.msra.gmra.mxu0 %vm1285_vm0, %v6331_v19  ;;  %v5276_v19 = vld [vmem:[%s7605_s4 + $0x50] ss:$8 sps:$4 sm:$0xff]   ;;  %1989 = vmatprep.subr.bf16.mxu1 %v5332_v36 }
  0xdc   :  { %1941 = vmatpush1.bf16.msra.mxu0 %v5270_v12 }
  0xdd   :  { %1942 = vmatprep.subr.bf16.mxu0 %v5275_v23 }
  0xde   :  { %1990 = vmatpush1.bf16.msra.mxu1 %v5330_v38 }
  0xe0   :  { %1943 = vmatpush1.bf16.msra.mxu0 %v5273_v5 }
  0xe1   :  { %1944 = vmatprep.subr.bf16.mxu0 %v5278_v8 }
  0xe4   :  { %1945 = vmatpush1.bf16.msra.mxu0 %v5276_v19 }
  0xe5   :  { %1946 = vmatprep.subr.bf16.mxu0 %v5281_v27 }
  0xe8   :  { %1947 = vmatpush1.bf16.msra.mxu0 %v5279_v29 }
  0xe9   :  { %1948 = vmatprep.subr.bf16.mxu0 %v5284_v31 }
  0xec   :  { %1949 = vmatpush1.bf16.msra.mxu0 %v5282_v33 }
  0xed   :  { %1950 = vmatprep.subr.bf16.mxu0 %v5287_v35 }
  0xf0   :  { %1951 = vmatpush1.bf16.msra.mxu0 %v5285_v37 }
  0xf1   :  { %1952 = vmatprep.subr.bf16.mxu0 %v5290_v39 }
  0xf4   :  { %1953 = vmatpush1.bf16.msra.mxu0 %v5288_v40 }
  0xf5   :  { %1954 = vmatprep.subr.bf16.mxu0 %v5293_v41 }
  0xf8   :  { %1955 = vmatpush1.bf16.msra.mxu0 %v5291_v42 }
  0xf9   :  { %1956 = vmatprep.subr.bf16.mxu0 %v5296_v43 }
  0xfc   :  { %1957 = vmatpush2.bf16.msra.mxu0 %v5294_v44 }
  0xfd   :  { %1958 = vmatprep.subr.bf16.mxu0 %v5299_v46 }
 0x100   :  { %1959 = vmatpush2.bf16.msra.mxu0 %v5297_v47 }
 0x101   :  { %1960 = vmatprep.subr.bf16.mxu0 %v5302_v49 }
 0x104   :  { %1961 = vmatpush2.bf16.msra.mxu0 %v5300_v50 }
 0x105   :  { %1962 = vmatprep.subr.bf16.mxu0 %v5305_v54 }
 0x108   :  { %1963 = vmatpush2.bf16.msra.mxu0 %v5303_v55 }
 0x109   :  { %1964 = vmatprep.subr.bf16.mxu0 %v5308_v57 }
 0x10b   :  { %v1323_v63 = vpop.f32.mrf.mxu0 }
 0x10c   :  { %v1324_v1 = vadd.f32 %v1323_v63, %v264_v60  ;;  %1965 = vmatpush2.bf16.msra.mxu0 %v5306_v58  ;;  %v1364_v3 = vpop.f32.mrf.mxu1 }
 0x10d   :  { %v1325_v2 = vpop.f32.mrf.mxu0  ;;  %1966 = vmatprep.subr.bf16.mxu0 %v5311_v59 }
 0x10e   :  { %v1326_v4 = vadd.f32 %v1325_v2, %v268_v61  ;;  %v1365_v6 = vadd.f32 %v1364_v3, %v1324_v1  ;;  %v1366_v9 = vpop.f32.mrf.mxu1 }
 0x10f   :  { %v1327_v7 = vpop.f32.mrf.mxu0 }
 0x110   :  { %v1367_v10 = vadd.f32 %v1366_v9, %v1326_v4  ;;  %1967 = vmatpush2.bf16.msra.mxu0 %v5309_v62 }
 0x111   :  { %25 = vsyncpa [#allocation5], 0  ;;  %v1328_v13 = vpop.f32.mrf.mxu0  ;;  %v1368_v14 = vpop.f32.mrf.mxu1  ;;  %1968 = vmatprep.subr.bf16.mxu0 %v5314_v0  ;;  %v5317_v15 = vld [vmem:[%s7605_s4 + $0x84] ss:$8 sps:$4 sm:$0xff]   ;;  %v5315_v20 = vld [vmem:[%s7605_s4 + $0x80] ss:$8 sps:$4 sm:$0xff]  }
 0x112   :  { %v5335_v17 = vld [vmem:[%s7605_s4 + $0x124] ss:$8 sps:$4 sm:$0xff]   ;;  %v5333_v21 = vld [vmem:[%s7605_s4 + $0x120] ss:$8 sps:$4 sm:$0xff]   ;;  %v5338_v22 = vld [vmem:[%s7605_s4 + $0x114] ss:$8 sps:$4 sm:$0xff]  }
 0x113   :  { %v1369_v16 = vpop.f32.mrf.mxu1  ;;  %1991 = vmatprep.subr.bf16.mxu1 %v5335_v17  ;;  %v5336_v12 = vld [vmem:[%s7605_s4 + $0x110] ss:$8 sps:$4 sm:$0xff]   ;;  %v5341_v23 = vld [vmem:[%s7605_s4 + $0x104] ss:$8 sps:$4 sm:$0xff]   ;;  %v5339_v5 = vld [vmem:[%s7605_s4 + $0x100] ss:$8 sps:$4 sm:$0xff]  }
 0x114   :  { %1969 = vmatpush2.bf16.msra.mxu0 %v5312_v11  ;;  %1992 = vmatpush1.bf16.msra.mxu1 %v5333_v21  ;;  %v5344_v8 = vld [vmem:[%s7605_s4 + $0x184] ss:$8 sps:$4 sm:$0xff]   ;;  %v5342_v24 = vld [vmem:[%s7605_s4 + $0x180] ss:$8 sps:$4 sm:$0xff]   ;;  %v6699_v43 = vsub.s32 2, %v6619_v48  ;;  %v6702_v45 = vsub.s32 3, %v6619_v48 }
 0x115   :  { %1970 = vmatprep.subr.bf16.mxu0 %v5317_v15  ;;  %1993 = vmatprep.subr.bf16.mxu1 %v5338_v22  ;;  %v5345_v14 = vld [vmem:[%s7607_s6 + $0x38] sm:$0xff]   ;;  %v5348_v16 = vld [vmem:[%s7609_s8 + $0x30] sm:$0xff]   ;;  %v5349_v21 = vld [vmem:[%s7607_s6 + $0x28] sm:$0xff]   ;;  %vm2137_vm1 = vcmask 1043456   ;;  %vm2133_vm2 = vcmask 588800   ;;  %vm2372_vm3 = vcmask 1041408  }
 0x116   :  { %v272_v47 = vrot.slane %v6642_v56, %v6699_v43  ;;  %v276_v50 = vrot.slane %v6642_v56, %v6702_v45  ;;  %v5346_v15 = vld [vmem:[%s7609_s8 + $0x38] sm:$0xff]   ;;  %v5347_v17 = vld [vmem:[%s7607_s6 + $0x30] sm:$0xff]   ;;  %v5352_v22 = vld [vmem:[%s7609_s8 + $0x20] sm:$0xff]   ;;  %vm2368_vm4 = vcmask 162816   ;;  %s7627_s27 = sld [smem:[#allocation10_spill]] }
 0x118   :  { %1971 = vmatpush2.bf16.msra.mxu0 %v5315_v20  ;;  %1994 = vmatpush1.bf16.msra.mxu1 %v5336_v12  ;;  %v5350_v20 = vld [vmem:[%s7609_s8 + $0x28] sm:$0xff]   ;;  %v5351_v12 = vld [vmem:[%s7607_s6 + $0x20] sm:$0xff]  }
 0x119   :  { %2291 = vmatprep.subr.bf16.mxu0 %v5796_v18  ;;  %1995 = vmatprep.subr.bf16.mxu1 %v5341_v23  ;;  %v5354_v23 = vld [vmem:[%s7609_s8 + $0x18] sm:$0xff]  }
 0x11c   :  { %1996 = vmatpush1.bf16.msra.mxu1 %v5339_v5  ;;  %v5353_v5 = vld [vmem:[%s7607_s6 + $0x18] sm:$0xff]  }
 0x11d   :  { %2011 = vmatprep.subr.bf16.mxu1 %v5344_v8  ;;  %v5356_v8 = vld [vmem:[%s7609_s8 + $0x10] sm:$0xff]  }
 0x120   :  { %2012 = vmatpush2.bf16.msra.mxu1 %v5342_v24  ;;  %v5355_v24 = vld [vmem:[%s7607_s6 + $0x10] sm:$0xff]  }
 0x121   :  { %2141 = vmatprep.subr.bf16.mxu1 %v5796_v18 }
 0x14b   :  { %v1405_v25 = vpop.f32.mrf.mxu0 }
 0x14c   :  { %v1406_v30 = vadd.f32 %v1405_v25, %v1365_v6  ;;  %v5358_v25 = vld [vmem:[%s7609_s8 + $0x8] sm:$0xff]  }
 0x14d   :  { %v1407_v26 = vpop.f32.mrf.mxu0  ;;  %v1487_v19 = vpop.f32.mrf.mxu1 }
 0x14e   :  { %v1408_v33 = vadd.f32 %v1407_v26, %v1367_v10  ;;  %v1488_v57 = vadd.f32 %v1487_v19, %v272_v47  ;;  %v5357_v26 = vld [vmem:[%s7607_s6 + $0x8] sm:$0xff]   ;;  %v5360_v19 = vld [vmem:[%s7609_s8] sm:$0xff]  }
 0x14f   :  { %v1409_v27 = vpop.f32.mrf.mxu0  ;;  %v1489_v28 = vpop.f32.mrf.mxu1 }
 0x150   :  { %v1490_v59 = vadd.f32 %v1489_v28, %v276_v50  ;;  %v5359_v27 = vld [vmem:[%s7607_s6] sm:$0xff]  }
 0x151   :  { %v1410_v52 = vpop.f32.mrf.mxu0  ;;  %v1491_v29 = vpop.f32.mrf.mxu1  ;;  %v5362_v28 = vld [vmem:[%s7609_s8 + $0x60] ss:$0 sps:$4 sm:$0xff]  }
 0x152   :  { %v5361_v52 = vld [vmem:[%s7607_s6 + $0x60] ss:$0 sps:$4 sm:$0xff]   ;;  %v2289_v29 = vsel %vm2137_vm1, %v5362_v28, 0 }
 0x153   :  { %v1446_v31 = vpop.f32.mrf.mxu0  ;;  %v1492_v32 = vpop.f32.mrf.mxu1 }
 0x154   :  { %v1447_v34 = vadd.f32 %v1446_v31, %v1406_v30  ;;  %v2139_v30 = vsel %vm2137_vm1, %v5361_v52, 0  ;;  %v5364_v31 = vld [vmem:[%s7609_s8 + $0x58] sm:$0xff]  }
 0x155   :  { %v1448_v35 = vpop.f32.mrf.mxu0  ;;  %v5363_v32 = vld [vmem:[%s7607_s6 + $0x58] sm:$0xff]  }
 0x156   :  { %v1449_v36 = vadd.f32 %v1448_v35, %v1408_v33  ;;  %v1617_v37 = vmax.f32 %v1447_v34, 0.0  ;;  %v5366_v33 = vld [vmem:[%s7609_s8 + $0x50] sm:$0xff]   ;;  %v5367_v35 = vld [vmem:[%s7607_s6 + $0x48] sm:$0xff]  }
 0x157   :  { %v1450_v38 = vpop.f32.mrf.mxu0  ;;  %v5365_v34 = vld [vmem:[%s7607_s6 + $0x50] sm:$0xff]   ;;  %v5431_v52 = vld [vmem:[%s7613_s12 + $0x168] ss:$16 sps:$4 sm:$0xff]  }
 0x158   :  { %v1618_v39 = vmax.f32 %v1449_v36, 0.0  ;;  %v1621_v42 = vpack.c.bf16 %v1617_v37, %v1617_v37  ;;  %v5368_v36 = vld [vmem:[%s7609_s8 + $0x48] sm:$0xff]   ;;  %v5369_v37 = vld [vmem:[%s7607_s6 + $0x40] sm:$0xff]  }
 0x159   :  { %v1451_v40 = vpop.f32.mrf.mxu0  ;;  %v5370_v38 = vld [vmem:[%s7609_s8 + $0x40] sm:$0xff]  }
 0x15a   :  { %v1622_v41 = vpack.c.bf16 %v1618_v39, %v1618_v39 }
 0x15c   :  { %1972 = vmatprep.mubr.bf16.mxu0 %v1622_v41 }
 0x15d   :  { %1973 = vmatmul.mubr.bf16.vlgmr.msra.gmra.mxu0 %v1621_v42 }
 0x15e   :  { %2292 = vmatpush1.bf16.msra.mxu0 %v5346_v15  ;;  %v5391_v15 = vld [vmem:[%s7613_s12 + $0xa8] ss:$16 sps:$4 sm:$0xff]  }
 0x15f   :  { %2293 = vmatprep.subr.bf16.mxu0 %v5796_v18 }
 0x162   :  { %2294 = vmatpush1.bf16.msra.mxu0 %v5348_v16  ;;  %v5399_v16 = vld [vmem:[%s7613_s12 + $0x8c] ss:$16 sps:$4 sm:$0xff]  }
 0x163   :  { %2295 = vmatprep.subr.bf16.mxu0 %v5796_v18 }
 0x166   :  { %2296 = vmatpush1.bf16.msra.mxu0 %v5350_v20  ;;  %v5405_v20 = vld [vmem:[%s7613_s12 + $0x6c] ss:$16 sps:$4 sm:$0xff]  }
 0x167   :  { %2297 = vmatprep.subr.bf16.mxu0 %v5796_v18 }
 0x16a   :  { %2298 = vmatpush1.bf16.msra.mxu0 %v5352_v22  ;;  %v5411_v22 = vld [vmem:[%s7613_s12 + $0x4c] ss:$16 sps:$4 sm:$0xff]  }
 0x16b   :  { %2299 = vmatprep.subr.bf16.mxu0 %v5796_v18 }
 0x16e   :  { %2300 = vmatpush1.bf16.msra.mxu0 %v5354_v23  ;;  %v5417_v23 = vld [vmem:[%s7613_s12 + $0x2c] ss:$16 sps:$4 sm:$0xff]  }
 0x16f   :  { %2301 = vmatprep.subr.bf16.mxu0 %v5796_v18 }
 0x172   :  { %2302 = vmatpush1.bf16.msra.mxu0 %v5356_v8  ;;  %v5423_v8 = vld [vmem:[%s7613_s12 + $0xc] ss:$16 sps:$4 sm:$0xff]  }
 0x173   :  { %2303 = vmatprep.subr.bf16.mxu0 %v5796_v18 }
 0x176   :  { %2304 = vmatpush1.bf16.msra.mxu0 %v5358_v25  ;;  %v2473_v25 = vld [vmem:[%s7613_s12 + $0x188] sm:$0xff] }
 0x177   :  { %2305 = vmatprep.subr.bf16.mxu0 %v5796_v18 }
 0x17a   :  { %2306 = vmatpush1.bf16.msra.mxu0 %v5360_v19  ;;  %v4751_v19 = vcombine.low %v2473_v25, %v2473_v25 }
 0x17b   :  { %2313 = vmatprep.subr.bf16.mxu0 %v5796_v18 }
 0x17c   :  { %v2756_v28 = vsel %vm2137_vm1, %v4751_v19, 0  ;;  %v2341_v19 = vld [vmem:[%s7612_s11] sm:$0x3] }
 0x17e   :  { %2314 = vmatpush2.bf16.msra.mxu0 %v2289_v29  ;;  %v5439_v29 = vld [vmem:[%s7613_s12 + $0x14c] ss:$16 sps:$4 sm:$0xff]  }
 0x17f   :  { %2315 = vmatprep.subr.bf16.mxu0 %v5796_v18 }
 0x182   :  { %2316 = vmatpush2.bf16.msra.mxu0 %v5364_v31  ;;  %v4665_v31 = vld [vmem:[%s7608_s7] ss:$0 sm:$0xff] }
 0x183   :  { %2317 = vmatprep.subr.bf16.mxu0 %v5796_v18 }
 0x186   :  { %2318 = vmatpush2.bf16.msra.mxu0 %v5366_v33 }
 0x187   :  { %2319 = vmatprep.subr.bf16.mxu0 %v5796_v18 }
 0x18a   :  { %2320 = vmatpush2.bf16.msra.mxu0 %v5368_v36 }
 0x18b   :  { %2321 = vmatprep.subr.bf16.mxu0 %v5796_v18 }
 0x18d   :  { %v1569_v44 = vpop.f32.mrf.mxu1 }
 0x18e   :  { %2322 = vmatpush2.bf16.msra.mxu0 %v5370_v38 }
 0x18f   :  { %v1571_v46 = vpop.f32.mrf.mxu1 }
 0x191   :  { %v1573_v49 = vpop.f32.mrf.mxu1 }
 0x193   :  { %v1528_v54 = vpop.f32.mrf.mxu0  ;;  %v1574_v55 = vpop.f32.mrf.mxu1 }
 0x194   :  { %v1529_v60 = vadd.f32 %v1528_v54, %v1488_v57 }
 0x195   :  { %v1530_v58 = vpop.f32.mrf.mxu0 }
 0x196   :  { %v1531_v62 = vadd.f32 %v1530_v58, %v1490_v59  ;;  %v1570_v0 = vadd.f32 %v1569_v44, %v1529_v60  ;;  %v1675_v44 = vld [vmem:[%s7606_s5] sm:$0x3] }
 0x197   :  { %v1532_v61 = vpop.f32.mrf.mxu0  ;;  %v1684_v47 = vrot.slane %v1675_v44, %v6631_v53 }
 0x198   :  { %v1572_v2 = vadd.f32 %v1571_v46, %v1531_v62  ;;  %v1680_v46 = vrot.slane %v1675_v44, %v6628_v51 }
 0x199   :  { %v1533_v63 = vpop.f32.mrf.mxu0 }
 0x19b   :  { %v1610_v1 = vpop.f32.mrf.mxu0 }
 0x19c   :  { %v1611_v3 = vadd.f32 %v1610_v1, %v1570_v0  ;;  %v2340_v1 = vld [vmem:[%s7611_s10 + $0x10] sm:$0x33] }
 0x19d   :  { %v1612_v4 = vpop.f32.mrf.mxu0 }
 0x19e   :  { %v1613_v6 = vadd.f32 %v1612_v4, %v1572_v2  ;;  %v1619_v7 = vmax.f32 %v1611_v3, 0.0  ;;  %v4698_v2 = vcombine.high %v2340_v1, %v2340_v1  ;;  %v4697_v3 = vcombine.low %v2340_v1, %v2340_v1  ;;  %v5375_v4 = vld [vmem:[%s7611_s10 + $0x4] ss:$8 sps:$4 sm:$0xff]   ;;  %v5400_v1 = vld [vmem:[%s7613_s12 + $0x60] ss:$16 sps:$4 sm:$0xff]  }
 0x19f   :  { %v1614_v9 = vpop.f32.mrf.mxu0 }
 0x1a0   :  { %v1620_v10 = vmax.f32 %v1613_v6, 0.0  ;;  %v1623_v13 = vpack.c.bf16 %v1619_v7, %v1619_v7  ;;  %v2374_v6 = vsel %vm2372_vm3, %v4697_v3, 0  ;;  %v5373_v7 = vld [vmem:[%s7611_s10] ss:$8 sps:$4 sm:$0xff]   ;;  %v5378_v9 = vld [vmem:[%s7613_s12 + $0xe4] ss:$16 sps:$4 sm:$0xff]  }
 0x1a1   :  { %v1615_v11 = vpop.f32.mrf.mxu0  ;;  %v5406_v3 = vld [vmem:[%s7613_s12 + $0x40] ss:$16 sps:$4 sm:$0xff]  }
 0x1a2   :  { %v1624_v56 = vpack.c.bf16 %v1620_v10, %v1620_v10  ;;  %v5379_v10 = vld [vmem:[%s7613_s12 + $0xe8] ss:$16 sps:$4 sm:$0xff]   ;;  %v5381_v11 = vld [vmem:[%s7613_s12 + $0xec] ss:$16 sps:$4 sm:$0xff]  }
 0x1a3   :  { %2802 = vmatprep.subr.bf16.mxu0 %v5381_v11 }
 0x1a4   :  { %4664 = vmatprep.mubr.msk.bf16.mxu1 %vm1285_vm0, %v1624_v56  ;;  %v5387_v56 = vld [vmem:[%s7613_s12 + $0xcc] ss:$16 sps:$4 sm:$0xff]  }
 0x1a5   :  { %2014 = vmatmul.mubr.bf16.vlgmr.msra.gmra.mxu1 %v1623_v13  ;;  %v5385_v13 = vld [vmem:[%s7613_s12 + $0xc8] ss:$16 sps:$4 sm:$0xff]  }
 0x1a6   :  { %2142 = vmatpush1.bf16.msra.mxu1 %v5345_v14  ;;  %v5393_v14 = vld [vmem:[%s7613_s12 + $0xac] ss:$16 sps:$4 sm:$0xff]  }
 0x1a7   :  { %2143 = vmatprep.subr.bf16.mxu1 %v5796_v18 }
 0x1aa   :  { %2144 = vmatpush1.bf16.msra.mxu1 %v5347_v17  ;;  %v5397_v17 = vld [vmem:[%s7613_s12 + $0x88] ss:$16 sps:$4 sm:$0xff]  }
 0x1ab   :  { %2145 = vmatprep.subr.bf16.mxu1 %v5796_v18 }
 0x1ae   :  { %2146 = vmatpush1.bf16.msra.mxu1 %v5349_v21  ;;  %v5403_v21 = vld [vmem:[%s7613_s12 + $0x68] ss:$16 sps:$4 sm:$0xff]  }
 0x1af   :  { %2147 = vmatprep.subr.bf16.mxu1 %v5796_v18 }
 0x1b2   :  { %2148 = vmatpush1.bf16.msra.mxu1 %v5351_v12  ;;  %v5409_v12 = vld [vmem:[%s7613_s12 + $0x48] ss:$16 sps:$4 sm:$0xff]  }
 0x1b3   :  { %2149 = vmatprep.subr.bf16.mxu1 %v5796_v18 }
 0x1b6   :  { %2150 = vmatpush1.bf16.msra.mxu1 %v5353_v5  ;;  %v5415_v5 = vld [vmem:[%s7613_s12 + $0x28] ss:$16 sps:$4 sm:$0xff]  }
 0x1b7   :  { %2151 = vmatprep.subr.bf16.mxu1 %v5796_v18 }
 0x1ba   :  { %2152 = vmatpush1.bf16.msra.mxu1 %v5355_v24  ;;  %v5421_v24 = vld [vmem:[%s7613_s12 + $0x8] ss:$16 sps:$4 sm:$0xff]  }
 0x1bb   :  { %2153 = vmatprep.subr.bf16.mxu1 %v5796_v18 }
 0x1be   :  { %2154 = vmatpush1.bf16.msra.mxu1 %v5357_v26  ;;  %v4752_v26 = vcombine.high %v2473_v25, %v2473_v25  ;;  %v5454_v25 = vld [vmem:[%s7615_s14 + $0x18c] ss:$28 sps:$4 sm:$0xff]  }
 0x1bf   :  { %2155 = vmatprep.subr.bf16.mxu1 %v5796_v18 }
 0x1c2   :  { %2156 = vmatpush1.bf16.msra.mxu1 %v5359_v27  ;;  %v5433_v27 = vld [vmem:[%s7613_s12 + $0x16c] ss:$16 sps:$4 sm:$0xff]  }
 0x1c3   :  { %2163 = vmatprep.subr.bf16.mxu1 %v5796_v18 }
 0x1c6   :  { %2164 = vmatpush2.bf16.msra.mxu1 %v2139_v30  ;;  %v5437_v30 = vld [vmem:[%s7613_s12 + $0x148] ss:$16 sps:$4 sm:$0xff]  }
 0x1c7   :  { %2165 = vmatprep.subr.bf16.mxu1 %v5796_v18 }
 0x1ca   :  { %2166 = vmatpush2.bf16.msra.mxu1 %v5363_v32  ;;  %v4680_v32 = vld [vmem:[%s7610_s9] ss:$0 sm:$0xff] }
 0x1cb   :  { %2167 = vmatprep.subr.bf16.mxu1 %v5796_v18 }
 0x1ce   :  { %2168 = vmatpush2.bf16.msra.mxu1 %v5365_v34 }
 0x1cf   :  { %2169 = vmatprep.subr.bf16.mxu1 %v5796_v18 }
 0x1d2   :  { %2170 = vmatpush2.bf16.msra.mxu1 %v5367_v35 }
 0x1d3   :  { %2171 = vmatprep.subr.bf16.mxu1 %v5796_v18 }
 0x1d6   :  { %2172 = vmatpush2.bf16.msra.mxu1 %v5369_v37 }
 0x1d7   :  { %4699 = vmatprep.subr.msk.bf16.mxu1 %vm2372_vm3, %v4698_v2  ;;  %v5408_v2 = vld [vmem:[%s7613_s12 + $0x44] ss:$16 sps:$4 sm:$0xff]  }
 0x21d   :  { %v1974_v39 = vpop.f32.mrf.mxu0 }
 0x21e   :  { %v1975_v49 = vadd.f32 %v1974_v39, %v1680_v46 }
 0x21f   :  { %v1976_v40 = vpop.f32.mrf.mxu0 }
 0x220   :  { %v1977_v54 = vadd.f32 %v1976_v40, %v1684_v47  ;;  %v2331_v47 = vld [vmem:[%s7627_s27] sm:$0xff] }
 0x221   :  { %v1978_v41 = vpop.f32.mrf.mxu0 }
 0x223   :  { %v1979_v42 = vpop.f32.mrf.mxu0 }
 0x265   :  { %v2015_v50 = vpop.f32.mrf.mxu1 }
 0x266   :  { %v2016_v55 = vadd.f32 %v2015_v50, %v1975_v49 }
 0x267   :  { %v2017_v57 = vpop.f32.mrf.mxu1 }
 0x268   :  { %v2018_v58 = vadd.f32 %v2017_v57, %v1977_v54  ;;  %v2022_v59 = vmax.f32 %v2016_v55, 0.0  ;;  %v5376_v55 = vld [vmem:[%s7613_s12 + $0xe0] ss:$16 sps:$4 sm:$0xff]  }
 0x269   :  { %v2019_v60 = vpop.f32.mrf.mxu1 }
 0x26a   :  { %v2023_v61 = vmax.f32 %v2018_v58, 0.0  ;;  %v2024_v0 = vpack.c.bf16 %v2022_v59, %v2022_v59  ;;  %v5384_v58 = vld [vmem:[%s7613_s12 + $0xc4] ss:$16 sps:$4 sm:$0xff]   ;;  %v5382_v59 = vld [vmem:[%s7613_s12 + $0xc0] ss:$16 sps:$4 sm:$0xff]  }
 0x26b   :  { %v2020_v62 = vpop.f32.mrf.mxu1  ;;  %v5390_v60 = vld [vmem:[%s7613_s12 + $0xa4] ss:$16 sps:$4 sm:$0xff]  }
 0x26c   :  { %v2025_v63 = vpack.c.bf16 %v2023_v61, %v2023_v61  ;;  %v5388_v61 = vld [vmem:[%s7613_s12 + $0xa0] ss:$16 sps:$4 sm:$0xff]   ;;  %v5396_v62 = vld [vmem:[%s7613_s12 + $0x84] ss:$16 sps:$4 sm:$0xff]  }
 0x26e   :  { %4679 = vmatprep.mubr.msk.bf16.mxu1 %vm2133_vm2, %v2025_v63  ;;  %4694 = vmatprep.mubr.msk.bf16.mxu0 %vm2133_vm2, %v2025_v63  ;;  %v5394_v63 = vld [vmem:[%s7613_s12 + $0x80] ss:$16 sps:$4 sm:$0xff]  }
 0x26f   :  { %2174 = vmatmul.mubr.bf16.vlgmr.msra.gmra.mxu1 %v2024_v0  ;;  %2324 = vmatmul.mubr.bf16.vlgmr.msra.gmra.mxu0 %v2024_v0  ;;  %v5402_v0 = vld [vmem:[%s7613_s12 + $0x64] ss:$16 sps:$4 sm:$0xff]  }
 0x270   :  { %2411 = vmatprep.mubr.bf16.mxu1 %v5796_v18  ;;  %2392 = vmatpush1.bf16.msra.mxu1 %v2374_v6  ;;  %v5412_v6 = vld [vmem:[%s7613_s12 + $0x20] ss:$16 sps:$4 sm:$0xff]  }
 0x271   :  { %2393 = vmatprep.subr.bf16.mxu1 %v5375_v4  ;;  %2803 = vmatpush1.bf16.msra.mxu0 %v5379_v10  ;;  %v5414_v4 = vld [vmem:[%s7613_s12 + $0x24] ss:$16 sps:$4 sm:$0xff]   ;;  %v5418_v10 = vld [vmem:[%s7613_s12] ss:$16 sps:$4 sm:$0xff]  }
 0x272   :  { %2804 = vmatprep.subr.bf16.mxu0 %v5387_v56 }
 0x274   :  { %2394 = vmatpush1.bf16.msra.mxu1 %v5373_v7  ;;  %v5420_v7 = vld [vmem:[%s7613_s12 + $0x4] ss:$16 sps:$4 sm:$0xff]  }
 0x275   :  { %2761 = vmatprep.subr.bf16.mxu1 %v5378_v9  ;;  %2805 = vmatpush1.bf16.msra.mxu0 %v5385_v13  ;;  %v2472_v9 = vld [vmem:[%s7613_s12 + $0x180] sm:$0xff] }
 0x276   :  { %2806 = vmatprep.subr.bf16.mxu0 %v5393_v14  ;;  %v4750_v11 = vcombine.high %v2472_v9, %v2472_v9  ;;  %v4749_v56 = vcombine.low %v2472_v9, %v2472_v9  ;;  %v5430_v14 = vld [vmem:[%s7613_s12 + $0x164] ss:$16 sps:$4 sm:$0xff]  }
 0x277   :  { %v5475_v9 = vld [vmem:[%s7615_s14 + $0x4] ss:$28 sps:$4 sm:$0xff]  }
 0x278   :  { %v2750_v13 = vsel %vm2137_vm1, %v4749_v56, 0  ;;  %v5479_v56 = vld [vmem:[%s7615_s14 + $0x348] ss:$28 sps:$4 sm:$0xff]  }
 0x279   :  { %2807 = vmatpush1.bf16.msra.mxu0 %v5391_v15  ;;  %v5428_v15 = vld [vmem:[%s7613_s12 + $0x160] ss:$16 sps:$4 sm:$0xff]  }
 0x27a   :  { %2808 = vmatprep.subr.bf16.mxu0 %v5399_v16  ;;  %v5436_v16 = vld [vmem:[%s7613_s12 + $0x144] ss:$16 sps:$4 sm:$0xff]  }
 0x27d   :  { %2809 = vmatpush1.bf16.msra.mxu0 %v5397_v17  ;;  %v5434_v17 = vld [vmem:[%s7613_s12 + $0x140] ss:$16 sps:$4 sm:$0xff]  }
 0x27e   :  { %2810 = vmatprep.subr.bf16.mxu0 %v5405_v20  ;;  %v5442_v20 = vld [vmem:[%s7613_s12 + $0x124] ss:$16 sps:$4 sm:$0xff]  }
 0x281   :  { %2811 = vmatpush1.bf16.msra.mxu0 %v5403_v21  ;;  %v5445_v21 = vld [vmem:[%s7613_s12 + $0x12c] ss:$16 sps:$4 sm:$0xff]  }
 0x282   :  { %2812 = vmatprep.subr.bf16.mxu0 %v5411_v22  ;;  %v5440_v22 = vld [vmem:[%s7613_s12 + $0x120] ss:$16 sps:$4 sm:$0xff]  }
 0x285   :  { %2813 = vmatpush1.bf16.msra.mxu0 %v5409_v12  ;;  %v5443_v12 = vld [vmem:[%s7613_s12 + $0x128] ss:$16 sps:$4 sm:$0xff]  }
 0x286   :  { %2814 = vmatprep.subr.bf16.mxu0 %v5417_v23  ;;  %v5448_v23 = vld [vmem:[%s7613_s12 + $0x104] ss:$16 sps:$4 sm:$0xff]  }
 0x289   :  { %2815 = vmatpush1.bf16.msra.mxu0 %v5415_v5  ;;  %v5451_v5 = vld [vmem:[%s7613_s12 + $0x10c] ss:$16 sps:$4 sm:$0xff]  }
 0x28a   :  { %2816 = vmatprep.subr.bf16.mxu0 %v5423_v8  ;;  %v5446_v8 = vld [vmem:[%s7613_s12 + $0x100] ss:$16 sps:$4 sm:$0xff]  }
 0x28d   :  { %2817 = vmatpush1.bf16.msra.mxu0 %v5421_v24  ;;  %v5449_v24 = vld [vmem:[%s7613_s12 + $0x108] ss:$16 sps:$4 sm:$0xff]  }
 0x28e   :  { %4755 = vmatprep.subr.msk.bf16.mxu0 %vm2137_vm1, %v4752_v26  ;;  %v5478_v26 = vld [vmem:[%s7615_s14 + $0x50c] ss:$28 sps:$4 sm:$0xff]  }
 0x291   :  { %2825 = vmatpush2.bf16.msra.mxu0 %v2756_v28  ;;  %v2350_v28 = vrot.slane %v2341_v19, %v6631_v53 }
 0x292   :  { %2826 = vmatprep.subr.bf16.mxu0 %v5433_v27  ;;  %v2346_v27 = vrot.slane %v2341_v19, %v6628_v51  ;;  %v5526_v19 = vld [vmem:[%s7615_s14 + $0x544] ss:$28 sps:$4 sm:$0xff]  }
 0x295   :  { %2827 = vmatpush2.bf16.msra.mxu0 %v5431_v52 }
 0x296   :  { %2828 = vmatprep.subr.bf16.mxu0 %v5439_v29 }
 0x299   :  { %2829 = vmatpush2.bf16.msra.mxu0 %v5437_v30 }
 0x29a   :  { %2830 = vmatprep.subr.bf16.mxu0 %v5445_v21  ;;  %v5505_v21 = vld [vmem:[%s7615_s14 + $0x26c] ss:$28 sps:$4 sm:$0xff]  }
 0x29d   :  { %2831 = vmatpush2.bf16.msra.mxu0 %v5443_v12  ;;  %v5511_v12 = vld [vmem:[%s7615_s14 + $0x234] ss:$28 sps:$4 sm:$0xff]  }
 0x29e   :  { %2832 = vmatprep.subr.bf16.mxu0 %v5451_v5  ;;  %v5517_v5 = vld [vmem:[%s7615_s14 + $0x1fc] ss:$28 sps:$4 sm:$0xff]  }
 0x2a1   :  { %2833 = vmatpush2.bf16.msra.mxu0 %v5449_v24  ;;  %v5515_v24 = vld [vmem:[%s7615_s14 + $0x1f8] ss:$28 sps:$4 sm:$0xff]  }
 0x2a2   :  { %4032 = vmatprep.subr.bf16.mxu0 %v5478_v26  ;;  %v5523_v26 = vld [vmem:[%s7615_s14 + $0x1c4] ss:$28 sps:$4 sm:$0xff]  }
 0x32f   :  { %v2175_v33 = vpop.f32.mrf.mxu1  ;;  %v2325_v34 = vpop.f32.mrf.mxu0 }
 0x330   :  { %v2176_v35 = vadd.f32 %v4665_v31, %v2175_v33  ;;  %v2326_v36 = vadd.f32 %v4680_v32, %v2325_v34 }
 0x331   :  { %v2177_v37 = vpop.f32.mrf.mxu1  ;;  %v2327_v38 = vpop.f32.mrf.mxu0 }
 0x332   :  { %v2332_v39 = vmul.f32 0.5, %v2326_v36  ;;  %4366 = vst.msk [vmem:[#allocation4] sm:$0xff] %vm2368_vm4, %v2176_v35  ;;  %4367 = vst.msk [vmem:[#allocation6] sm:$0xff] %vm2368_vm4, %v2326_v36  ;;  %v5452_v37 = vld [vmem:[%s7615_s14 + $0x188] ss:$28 sps:$4 sm:$0xff]  }
 0x333   :  { %v2178_v40 = vpop.f32.mrf.mxu1  ;;  %v2328_v41 = vpop.f32.mrf.mxu0  ;;  %v5476_v38 = vld [vmem:[%s7615_s14 + $0x508] ss:$28 sps:$4 sm:$0xff]  }
 0x334   :  { %v2333_v42 = vmul.f32 1.442695, %v2332_v39  ;;  %v5457_v40 = vld [vmem:[%s7615_s14 + $0x154] ss:$28 sps:$4 sm:$0xff]  }
 0x335   :  { %v2179_v44 = vpop.f32.mrf.mxu1  ;;  %v2329_v46 = vpop.f32.mrf.mxu0  ;;  %v5484_v41 = vld [vmem:[%s7615_s14 + $0x4d4] ss:$28 sps:$4 sm:$0xff]  }
 0x336   :  { %5702 = vpow2.f32 %v2333_v42  ;;  %v5455_v42 = vld [vmem:[%s7615_s14 + $0x150] ss:$28 sps:$4 sm:$0xff]   ;;  %v5460_v46 = vld [vmem:[%s7615_s14 + $0x11c] ss:$28 sps:$4 sm:$0xff]  }
 0x337   :  { %v5482_v44 = vld [vmem:[%s7615_s14 + $0x4d0] ss:$28 sps:$4 sm:$0xff]  }
 0x343   :  { %v5703_v49 = vpop.eup %5702 }
 0x344   :  { %v2335_v50 = vmul.f32 %v5703_v49, %v2331_v47  ;;  %v5490_v47 = vld [vmem:[%s7615_s14 + $0x49c] ss:$28 sps:$4 sm:$0xff]  }
 0x345   :  { %v5458_v49 = vld [vmem:[%s7615_s14 + $0x118] ss:$28 sps:$4 sm:$0xff]  }
 0x346   :  { %v2336_v54 = vadd.f32 %v2335_v50, %v2176_v35  ;;  %v5488_v50 = vld [vmem:[%s7615_s14 + $0x498] ss:$28 sps:$4 sm:$0xff]  }
 0x348   :  { %v2337_v57 = vpack.c.bf16 %v2336_v54, %v2336_v54  ;;  %v5463_v54 = vld [vmem:[%s7615_s14 + $0xe4] ss:$28 sps:$4 sm:$0xff]  }
 0x34a   :  { %4700 = vmatmul.mubr.msk.bf16.vlgmr.msra.gmra.mxu1 %vm2368_vm4, %v2337_v57  ;;  %v5461_v57 = vld [vmem:[%s7615_s14 + $0xe0] ss:$28 sps:$4 sm:$0xff]  }
 0x34b   :  { %2762 = vmatpush1.bf16.msra.mxu1 %v5376_v55  ;;  %v5496_v55 = vld [vmem:[%s7615_s14 + $0x464] ss:$28 sps:$4 sm:$0xff]  }
 0x34c   :  { %2763 = vmatprep.subr.bf16.mxu1 %v5384_v58  ;;  %v5494_v58 = vld [vmem:[%s7615_s14 + $0x460] ss:$28 sps:$4 sm:$0xff]  }
 0x34f   :  { %2764 = vmatpush1.bf16.msra.mxu1 %v5382_v59  ;;  %v5466_v59 = vld [vmem:[%s7615_s14 + $0xac] ss:$28 sps:$4 sm:$0xff]  }
 0x350   :  { %2765 = vmatprep.subr.bf16.mxu1 %v5390_v60  ;;  %v5502_v60 = vld [vmem:[%s7615_s14 + $0x42c] ss:$28 sps:$4 sm:$0xff]  }
 0x353   :  { %2766 = vmatpush1.bf16.msra.mxu1 %v5388_v61  ;;  %v5464_v61 = vld [vmem:[%s7615_s14 + $0xa8] ss:$28 sps:$4 sm:$0xff]  }
 0x354   :  { %2767 = vmatprep.subr.bf16.mxu1 %v5396_v62  ;;  %v5500_v62 = vld [vmem:[%s7615_s14 + $0x428] ss:$28 sps:$4 sm:$0xff]  }
 0x357   :  { %2768 = vmatpush1.bf16.msra.mxu1 %v5394_v63  ;;  %v5469_v63 = vld [vmem:[%s7615_s14 + $0x74] ss:$28 sps:$4 sm:$0xff]  }
 0x358   :  { %2769 = vmatprep.subr.bf16.mxu1 %v5402_v0  ;;  %v5508_v0 = vld [vmem:[%s7615_s14 + $0x3f4] ss:$28 sps:$4 sm:$0xff]  }
 0x35b   :  { %2770 = vmatpush1.bf16.msra.mxu1 %v5400_v1  ;;  %v5467_v1 = vld [vmem:[%s7615_s14 + $0x70] ss:$28 sps:$4 sm:$0xff]  }
 0x35c   :  { %2771 = vmatprep.subr.bf16.mxu1 %v5408_v2  ;;  %v5506_v2 = vld [vmem:[%s7615_s14 + $0x3f0] ss:$28 sps:$4 sm:$0xff]  }
 0x35f   :  { %2772 = vmatpush1.bf16.msra.mxu1 %v5406_v3  ;;  %v5472_v3 = vld [vmem:[%s7615_s14 + $0x3c] ss:$28 sps:$4 sm:$0xff]  }
 0x360   :  { %2773 = vmatprep.subr.bf16.mxu1 %v5414_v4  ;;  %v5514_v4 = vld [vmem:[%s7615_s14 + $0x3bc] ss:$28 sps:$4 sm:$0xff]  }
 0x363   :  { %2774 = vmatpush1.bf16.msra.mxu1 %v5412_v6  ;;  %v5470_v6 = vld [vmem:[%s7615_s14 + $0x38] ss:$28 sps:$4 sm:$0xff]  }
 0x364   :  { %2775 = vmatprep.subr.bf16.mxu1 %v5420_v7  ;;  %v5512_v7 = vld [vmem:[%s7615_s14 + $0x3b8] ss:$28 sps:$4 sm:$0xff]  }
 0x367   :  { %2776 = vmatpush1.bf16.msra.mxu1 %v5418_v10  ;;  %v5473_v10 = vld [vmem:[%s7615_s14] ss:$28 sps:$4 sm:$0xff]  }
 0x368   :  { %4753 = vmatprep.subr.msk.bf16.mxu1 %vm2137_vm1, %v4750_v11  ;;  %v5481_v11 = vld [vmem:[%s7615_s14 + $0x34c] ss:$28 sps:$4 sm:$0xff]  }
 0x36b   :  { %2784 = vmatpush2.bf16.msra.mxu1 %v2750_v13  ;;  %v5487_v13 = vld [vmem:[%s7615_s14 + $0x314] ss:$28 sps:$4 sm:$0xff]  }
 0x36c   :  { %2785 = vmatprep.subr.bf16.mxu1 %v5430_v14  ;;  %v5485_v14 = vld [vmem:[%s7615_s14 + $0x310] ss:$28 sps:$4 sm:$0xff]  }
 0x36f   :  { %2786 = vmatpush2.bf16.msra.mxu1 %v5428_v15  ;;  %v5493_v15 = vld [vmem:[%s7615_s14 + $0x2dc] ss:$28 sps:$4 sm:$0xff]  }
 0x370   :  { %2787 = vmatprep.subr.bf16.mxu1 %v5436_v16  ;;  %v5491_v16 = vld [vmem:[%s7615_s14 + $0x2d8] ss:$28 sps:$4 sm:$0xff]  }
 0x373   :  { %2788 = vmatpush2.bf16.msra.mxu1 %v5434_v17  ;;  %v5499_v17 = vld [vmem:[%s7615_s14 + $0x2a4] ss:$28 sps:$4 sm:$0xff]  }
 0x374   :  { %2789 = vmatprep.subr.bf16.mxu1 %v5442_v20  ;;  %v5497_v20 = vld [vmem:[%s7615_s14 + $0x2a0] ss:$28 sps:$4 sm:$0xff]  }
 0x377   :  { %2790 = vmatpush2.bf16.msra.mxu1 %v5440_v22  ;;  %v5503_v22 = vld [vmem:[%s7615_s14 + $0x268] ss:$28 sps:$4 sm:$0xff]  }
 0x378   :  { %2791 = vmatprep.subr.bf16.mxu1 %v5448_v23  ;;  %v5509_v23 = vld [vmem:[%s7615_s14 + $0x230] ss:$28 sps:$4 sm:$0xff]  }
 0x37b   :  { %2792 = vmatpush2.bf16.msra.mxu1 %v5446_v8  ;;  %v5520_v8 = vld [vmem:[%s7615_s14 + $0x384] ss:$28 sps:$4 sm:$0xff]  }
 0x37c   :  { %3991 = vmatprep.subr.bf16.mxu1 %v5454_v25  ;;  %v5518_v25 = vld [vmem:[%s7615_s14 + $0x380] ss:$28 sps:$4 sm:$0xff]  }
 0x40a   :  { %v2413_v52 = vpop.f32.mrf.mxu1 }
 0x40b   :  { %v2414_v29 = vadd.f32 %v2413_v52, %v2346_v27  ;;  %v5521_v27 = vld [vmem:[%s7615_s14 + $0x1c0] ss:$28 sps:$4 sm:$0xff]   ;;  %v5529_v52 = vld [vmem:[%s7615_s14 + $0x194] ss:$28 sps:$4 sm:$0xff]  }
 0x40c   :  { %v2415_v30 = vpop.f32.mrf.mxu1 }
 0x40d   :  { %v2416_v31 = vadd.f32 %v2415_v30, %v2350_v28  ;;  %v2420_v32 = vmax.f32 %v2414_v29, 0.0  ;;  %v5524_v28 = vld [vmem:[%s7615_s14 + $0x540] ss:$28 sps:$4 sm:$0xff]   ;;  %v5532_v29 = vld [vmem:[%s7615_s14 + $0x514] ss:$28 sps:$4 sm:$0xff]  }
 0x40e   :  { %v2417_v33 = vpop.f32.mrf.mxu1  ;;  %v2474_v30 = vld [vmem:[%s7614_s13] sm:$0xf] }
 0x40f   :  { %v2421_v34 = vmax.f32 %v2416_v31, 0.0  ;;  %v2422_v39 = vpack.c.bf16 %v2420_v32, %v2420_v32  ;;  %v2479_v31 = vrot.slane %v2474_v30, %v6628_v51  ;;  %v2487_v32 = vrot.slane %v2474_v30, %v6699_v43 }
 0x410   :  { %v2418_v35 = vpop.f32.mrf.mxu1  ;;  %v2483_v33 = vrot.slane %v2474_v30, %v6631_v53 }
 0x411   :  { %v2423_v36 = vpack.c.bf16 %v2421_v34, %v2421_v34  ;;  %v2491_v34 = vrot.slane %v2474_v30, %v6702_v45  ;;  %v5578_v30 = vld [vmem:[%s7615_s14 + $0x548] ss:$28 sps:$4 sm:$0xff]  }
 0x413   :  { %4754 = vmatprep.mubr.msk.bf16.mxu1 %vm2133_vm2, %v2423_v36  ;;  %4756 = vmatprep.mubr.msk.bf16.mxu0 %vm2133_vm2, %v2423_v36 }
 0x414   :  { %2794 = vmatmul.mubr.bf16.vlgmr.msra.gmra.mxu1 %v2422_v39  ;;  %2835 = vmatmul.mubr.bf16.vlgmr.msra.gmra.mxu0 %v2422_v39 }
 0x415   :  { %3992 = vmatpush1.bf16.msra.mxu1 %v5452_v37  ;;  %4033 = vmatpush1.bf16.msra.mxu0 %v5476_v38 }
 0x416   :  { %3993 = vmatprep.subr.bf16.mxu1 %v5457_v40  ;;  %4034 = vmatprep.subr.bf16.mxu0 %v5484_v41 }
 0x419   :  { %3994 = vmatpush1.bf16.msra.mxu1 %v5455_v42  ;;  %4035 = vmatpush1.bf16.msra.mxu0 %v5482_v44 }
 0x41a   :  { %3995 = vmatprep.subr.bf16.mxu1 %v5460_v46  ;;  %4036 = vmatprep.subr.bf16.mxu0 %v5490_v47 }
 0x41d   :  { %3996 = vmatpush1.bf16.msra.mxu1 %v5458_v49  ;;  %4037 = vmatpush1.bf16.msra.mxu0 %v5488_v50 }
 0x41e   :  { %3997 = vmatprep.subr.bf16.mxu1 %v5463_v54  ;;  %4038 = vmatprep.subr.bf16.mxu0 %v5496_v55 }
 0x421   :  { %3998 = vmatpush1.bf16.msra.mxu1 %v5461_v57  ;;  %4039 = vmatpush1.bf16.msra.mxu0 %v5494_v58 }
 0x422   :  { %3999 = vmatprep.subr.bf16.mxu1 %v5466_v59  ;;  %4040 = vmatprep.subr.bf16.mxu0 %v5502_v60  ;;  %v5527_v60 = vld [vmem:[%s7615_s14 + $0x190] ss:$28 sps:$4 sm:$0xff]  }
 0x425   :  { %4000 = vmatpush1.bf16.msra.mxu1 %v5464_v61  ;;  %4041 = vmatpush1.bf16.msra.mxu0 %v5500_v62  ;;  %v5530_v61 = vld [vmem:[%s7615_s14 + $0x510] ss:$28 sps:$4 sm:$0xff]  }
 0x426   :  { %4001 = vmatprep.subr.bf16.mxu1 %v5469_v63  ;;  %4042 = vmatprep.subr.bf16.mxu0 %v5508_v0  ;;  %v5535_v0 = vld [vmem:[%s7615_s14 + $0x15c] ss:$28 sps:$4 sm:$0xff]  }
 0x429   :  { %4002 = vmatpush1.bf16.msra.mxu1 %v5467_v1  ;;  %4043 = vmatpush1.bf16.msra.mxu0 %v5506_v2  ;;  %v5538_v1 = vld [vmem:[%s7615_s14 + $0x4dc] ss:$28 sps:$4 sm:$0xff]  }
 0x42a   :  { %4003 = vmatprep.subr.bf16.mxu1 %v5472_v3  ;;  %4044 = vmatprep.subr.bf16.mxu0 %v5514_v4  ;;  %v5533_v2 = vld [vmem:[%s7615_s14 + $0x158] ss:$28 sps:$4 sm:$0xff]   ;;  %v5541_v4 = vld [vmem:[%s7615_s14 + $0x124] ss:$28 sps:$4 sm:$0xff]  }
 0x42b   :  { %v5536_v3 = vld [vmem:[%s7615_s14 + $0x4d8] ss:$28 sps:$4 sm:$0xff]  }
 0x42d   :  { %4004 = vmatpush1.bf16.msra.mxu1 %v5470_v6  ;;  %4045 = vmatpush1.bf16.msra.mxu0 %v5512_v7  ;;  %v5544_v6 = vld [vmem:[%s7615_s14 + $0x4a4] ss:$28 sps:$4 sm:$0xff]  }
 0x42e   :  { %4005 = vmatprep.subr.bf16.mxu1 %v5475_v9  ;;  %4046 = vmatprep.subr.bf16.mxu0 %v5520_v8  ;;  %v5539_v7 = vld [vmem:[%s7615_s14 + $0x120] ss:$28 sps:$4 sm:$0xff]  }
 0x42f   :  { %v5542_v9 = vld [vmem:[%s7615_s14 + $0x4a0] ss:$28 sps:$4 sm:$0xff]  }
 0x430   :  { %v5563_v8 = vld [vmem:[%s7615_s14 + $0x40] ss:$28 sps:$4 sm:$0xff]  }
 0x431   :  { %4006 = vmatpush1.bf16.msra.mxu1 %v5473_v10  ;;  %4047 = vmatpush1.bf16.msra.mxu0 %v5518_v25  ;;  %v5547_v10 = vld [vmem:[%s7615_s14 + $0xec] ss:$28 sps:$4 sm:$0xff]  }
 0x432   :  { %4007 = vmatprep.subr.bf16.mxu1 %v5481_v11  ;;  %4062 = vmatprep.subr.bf16.mxu0 %v5526_v19  ;;  %v5550_v11 = vld [vmem:[%s7615_s14 + $0x46c] ss:$28 sps:$4 sm:$0xff]  }
 0x433   :  { %v5571_v25 = vld [vmem:[%s7615_s14 + $0xc] ss:$28 sps:$4 sm:$0xff]  }
 0x434   :  { %v5569_v19 = vld [vmem:[%s7615_s14 + $0x8] ss:$28 sps:$4 sm:$0xff]  }
 0x435   :  { %4008 = vmatpush2.bf16.msra.mxu1 %v5479_v56  ;;  %4063 = vmatpush2.bf16.msra.mxu0 %v5524_v28  ;;  %v5545_v56 = vld [vmem:[%s7615_s14 + $0xe8] ss:$28 sps:$4 sm:$0xff]   ;;  %v5577_v28 = vld [vmem:[%s7615_s14 + $0x354] ss:$28 sps:$4 sm:$0xff]  }
 0x436   :  { %4009 = vmatprep.subr.bf16.mxu1 %v5487_v13  ;;  %4073 = vmatprep.subr.bf16.mxu0 %v5529_v52  ;;  %v5548_v13 = vld [vmem:[%s7615_s14 + $0x468] ss:$28 sps:$4 sm:$0xff]  }
 0x437   :  { %v5580_v52 = vld [vmem:[%s7615_s14 + $0x54c] ss:$28 sps:$4 sm:$0xff]  }
 0x439   :  { %4010 = vmatpush2.bf16.msra.mxu1 %v5485_v14  ;;  %v5553_v14 = vld [vmem:[%s7615_s14 + $0xb4] ss:$28 sps:$4 sm:$0xff]  }
 0x43a   :  { %4011 = vmatprep.subr.bf16.mxu1 %v5493_v15  ;;  %v5556_v15 = vld [vmem:[%s7615_s14 + $0x434] ss:$28 sps:$4 sm:$0xff]  }
 0x43d   :  { %4012 = vmatpush2.bf16.msra.mxu1 %v5491_v16  ;;  %v5551_v16 = vld [vmem:[%s7615_s14 + $0xb0] ss:$28 sps:$4 sm:$0xff]  }
 0x43e   :  { %4013 = vmatprep.subr.bf16.mxu1 %v5499_v17  ;;  %v5554_v17 = vld [vmem:[%s7615_s14 + $0x430] ss:$28 sps:$4 sm:$0xff]  }
 0x441   :  { %4014 = vmatpush2.bf16.msra.mxu1 %v5497_v20  ;;  %v5559_v20 = vld [vmem:[%s7615_s14 + $0x7c] ss:$28 sps:$4 sm:$0xff]  }
 0x442   :  { %4015 = vmatprep.subr.bf16.mxu1 %v5505_v21  ;;  %v5562_v21 = vld [vmem:[%s7615_s14 + $0x3fc] ss:$28 sps:$4 sm:$0xff]  }
 0x445   :  { %4016 = vmatpush2.bf16.msra.mxu1 %v5503_v22  ;;  %v5557_v22 = vld [vmem:[%s7615_s14 + $0x78] ss:$28 sps:$4 sm:$0xff]  }
 0x446   :  { %4017 = vmatprep.subr.bf16.mxu1 %v5511_v12  ;;  %v5560_v12 = vld [vmem:[%s7615_s14 + $0x3f8] ss:$28 sps:$4 sm:$0xff]  }
 0x449   :  { %4018 = vmatpush2.bf16.msra.mxu1 %v5509_v23  ;;  %v5565_v23 = vld [vmem:[%s7615_s14 + $0x44] ss:$28 sps:$4 sm:$0xff]  }
 0x44a   :  { %4019 = vmatprep.subr.bf16.mxu1 %v5517_v5  ;;  %v5568_v5 = vld [vmem:[%s7615_s14 + $0x3c4] ss:$28 sps:$4 sm:$0xff]  }
 0x44d   :  { %4020 = vmatpush2.bf16.msra.mxu1 %v5515_v24  ;;  %v5566_v24 = vld [vmem:[%s7615_s14 + $0x3c0] ss:$28 sps:$4 sm:$0xff]  }
 0x44e   :  { %4021 = vmatprep.subr.bf16.mxu1 %v5523_v26  ;;  %v5574_v26 = vld [vmem:[%s7615_s14 + $0x38c] ss:$28 sps:$4 sm:$0xff]  }
 0x451   :  { %4022 = vmatpush2.bf16.msra.mxu1 %v5521_v27  ;;  %v5572_v27 = vld [vmem:[%s7615_s14 + $0x388] ss:$28 sps:$4 sm:$0xff]  }
 0x452   :  { %4114 = vmatprep.subr.bf16.mxu1 %v5532_v29  ;;  %v5575_v29 = vld [vmem:[%s7615_s14 + $0x350] ss:$28 sps:$4 sm:$0xff]  }
 0x4d4   :  { %v2795_v35 = vpop.f32.mrf.mxu1  ;;  %v2836_v36 = vpop.f32.mrf.mxu0 }
 0x4d5   :  { %v2796_v37 = vadd.f32 %v2795_v35, %v2479_v31  ;;  %v2837_v38 = vadd.f32 %v2836_v36, %v2487_v32  ;;  %v5583_v31 = vld [vmem:[%s7615_s14 + $0x31c] ss:$28 sps:$4 sm:$0xff]   ;;  %v5589_v35 = vld [vmem:[%s7615_s14 + $0x2e4] ss:$28 sps:$4 sm:$0xff]  }
 0x4d6   :  { %v2797_v39 = vpop.f32.mrf.mxu1  ;;  %v2838_v40 = vpop.f32.mrf.mxu0  ;;  %v5586_v32 = vld [vmem:[%s7615_s14 + $0x19c] ss:$28 sps:$4 sm:$0xff]   ;;  %v5592_v36 = vld [vmem:[%s7615_s14 + $0x164] ss:$28 sps:$4 sm:$0xff]  }
 0x4d7   :  { %v2798_v41 = vadd.f32 %v2797_v39, %v2483_v33  ;;  %v2839_v42 = vadd.f32 %v2838_v40, %v2491_v34  ;;  %v2843_v44 = vmax.f32 %v2796_v37, 0.0  ;;  %v2845_v46 = vmax.f32 %v2837_v38, 0.0  ;;  %v5581_v33 = vld [vmem:[%s7615_s14 + $0x318] ss:$28 sps:$4 sm:$0xff]   ;;  %v5587_v37 = vld [vmem:[%s7615_s14 + $0x2e0] ss:$28 sps:$4 sm:$0xff]  }
 0x4d8   :  { %v2799_v47 = vpop.f32.mrf.mxu1  ;;  %v2840_v49 = vpop.f32.mrf.mxu0  ;;  %v5584_v34 = vld [vmem:[%s7615_s14 + $0x198] ss:$28 sps:$4 sm:$0xff]   ;;  %v5590_v38 = vld [vmem:[%s7615_s14 + $0x160] ss:$28 sps:$4 sm:$0xff]   ;;  %v5595_v39 = vld [vmem:[%s7615_s14 + $0x2ac] ss:$28 sps:$4 sm:$0xff]  }
 0x4d9   :  { %v2844_v50 = vmax.f32 %v2798_v41, 0.0  ;;  %v2846_v54 = vmax.f32 %v2839_v42, 0.0  ;;  %v7176_v62 = vpack.c.bf16 %v2843_v44, %v2843_v44  ;;  %v7178_v63 = vpack.c.bf16 %v2845_v46, %v2845_v46  ;;  %v5598_v40 = vld [vmem:[%s7615_s14 + $0x12c] ss:$28 sps:$4 sm:$0xff]   ;;  %v5601_v44 = vld [vmem:[%s7615_s14 + $0x274] ss:$28 sps:$4 sm:$0xff]  }
 0x4da   :  { %v2800_v55 = vpop.f32.mrf.mxu1  ;;  %v2841_v57 = vpop.f32.mrf.mxu0  ;;  %v5593_v41 = vld [vmem:[%s7615_s14 + $0x2a8] ss:$28 sps:$4 sm:$0xff]   ;;  %v5604_v46 = vld [vmem:[%s7615_s14 + $0xf4] ss:$28 sps:$4 sm:$0xff]  }
 0x4db   :  { %v7166_v58 = vpack.c.bf16 %v2844_v50, %v2844_v50  ;;  %v7168_v59 = vpack.c.bf16 %v2846_v54, %v2846_v54  ;;  %v5596_v42 = vld [vmem:[%s7615_s14 + $0x128] ss:$28 sps:$4 sm:$0xff]   ;;  %v5599_v47 = vld [vmem:[%s7615_s14 + $0x270] ss:$28 sps:$4 sm:$0xff]   ;;  %v5607_v50 = vld [vmem:[%s7615_s14 + $0x23c] ss:$28 sps:$4 sm:$0xff]  }
 0x4dc   :  { %v5602_v49 = vld [vmem:[%s7615_s14 + $0xf0] ss:$28 sps:$4 sm:$0xff]   ;;  %v5610_v54 = vld [vmem:[%s7615_s14 + $0xbc] ss:$28 sps:$4 sm:$0xff]  }
 0x4dd   :  { %4023 = vmatprep.mubr.bf16.mxu1 %v7166_v58  ;;  %4932 = vmatprep.mubr.msk.bf16.mxu0 %vm1285_vm0, %v7168_v59  ;;  %v5605_v55 = vld [vmem:[%s7615_s14 + $0x238] ss:$28 sps:$4 sm:$0xff]  }
 0x4de   :  { %4024 = vmatmul.mubr.bf16.vlgmr.msra.gmra.mxu1 %v7176_v62  ;;  %4065 = vmatmul.mubr.bf16.vlgmr.msra.gmra.mxu0 %v7178_v63  ;;  %v5608_v57 = vld [vmem:[%s7615_s14 + $0xb8] ss:$28 sps:$4 sm:$0xff]  }
 0x4df   :  { %4074 = vmatpush1.bf16.msra.mxu0 %v5527_v60  ;;  %4115 = vmatpush1.bf16.msra.mxu1 %v5530_v61  ;;  %v5613_v60 = vld [vmem:[%s7615_s14 + $0x204] ss:$28 sps:$4 sm:$0xff]  }
 0x4e0   :  { %4105 = vmatprep.mubr.bf16.mxu0 %v7166_v58  ;;  %4933 = vmatprep.mubr.msk.bf16.mxu1 %vm1285_vm0, %v7168_v59  ;;  %v5616_v61 = vld [vmem:[%s7615_s14 + $0x84] ss:$28 sps:$4 sm:$0xff]  }
 0x4e1   :  { %4075 = vmatprep.subr.bf16.mxu0 %v5535_v0  ;;  %4116 = vmatprep.subr.bf16.mxu1 %v5538_v1  ;;  %v5611_v0 = vld [vmem:[%s7615_s14 + $0x200] ss:$28 sps:$4 sm:$0xff]  }
 0x4e2   :  { %v5614_v1 = vld [vmem:[%s7615_s14 + $0x80] ss:$28 sps:$4 sm:$0xff]  }
 0x4e3   :  { %4076 = vmatpush1.bf16.msra.mxu0 %v5533_v2  ;;  %4117 = vmatpush1.bf16.msra.mxu1 %v5536_v3  ;;  %v5619_v2 = vld [vmem:[%s7615_s14 + $0x1cc] ss:$28 sps:$4 sm:$0xff]  }
 0x4e4   :  { %4077 = vmatprep.subr.bf16.mxu0 %v5541_v4  ;;  %4118 = vmatprep.subr.bf16.mxu1 %v5544_v6  ;;  %v5622_v3 = vld [vmem:[%s7615_s14 + $0x4c] ss:$28 sps:$4 sm:$0xff]  }
 0x4e5   :  { %v5617_v4 = vld [vmem:[%s7615_s14 + $0x1c8] ss:$28 sps:$4 sm:$0xff]  }
 0x4e6   :  { %v5620_v6 = vld [vmem:[%s7615_s14 + $0x48] ss:$28 sps:$4 sm:$0xff]  }
 0x4e7   :  { %4078 = vmatpush1.bf16.msra.mxu0 %v5539_v7  ;;  %4119 = vmatpush1.bf16.msra.mxu1 %v5542_v9  ;;  %v5625_v7 = vld [vmem:[%s7615_s14 + $0x14] ss:$28 sps:$4 sm:$0xff]   ;;  %v5628_v9 = vld [vmem:[%s7615_s14 + $0x51c] ss:$28 sps:$4 sm:$0xff]  }
 0x4e8   :  { %4079 = vmatprep.subr.bf16.mxu0 %v5547_v10  ;;  %4120 = vmatprep.subr.bf16.mxu1 %v5550_v11  ;;  %v5623_v10 = vld [vmem:[%s7615_s14 + $0x10] ss:$28 sps:$4 sm:$0xff]   ;;  %v5626_v11 = vld [vmem:[%s7615_s14 + $0x518] ss:$28 sps:$4 sm:$0xff]  }
 0x4eb   :  { %4080 = vmatpush1.bf16.msra.mxu0 %v5545_v56  ;;  %4121 = vmatpush1.bf16.msra.mxu1 %v5548_v13  ;;  %v5631_v56 = vld [vmem:[%s7615_s14 + $0x35c] ss:$28 sps:$4 sm:$0xff]   ;;  %v5634_v13 = vld [vmem:[%s7615_s14 + $0x4e4] ss:$28 sps:$4 sm:$0xff]  }
 0x4ec   :  { %4081 = vmatprep.subr.bf16.mxu0 %v5553_v14  ;;  %4122 = vmatprep.subr.bf16.mxu1 %v5556_v15  ;;  %v5629_v14 = vld [vmem:[%s7615_s14 + $0x358] ss:$28 sps:$4 sm:$0xff]   ;;  %v5632_v15 = vld [vmem:[%s7615_s14 + $0x4e0] ss:$28 sps:$4 sm:$0xff]  }
 0x4ef   :  { %4082 = vmatpush1.bf16.msra.mxu0 %v5551_v16  ;;  %4123 = vmatpush1.bf16.msra.mxu1 %v5554_v17  ;;  %v5637_v16 = vld [vmem:[%s7615_s14 + $0x324] ss:$28 sps:$4 sm:$0xff]   ;;  %v5640_v17 = vld [vmem:[%s7615_s14 + $0x4ac] ss:$28 sps:$4 sm:$0xff]  }
 0x4f0   :  { %4083 = vmatprep.subr.bf16.mxu0 %v5559_v20  ;;  %4124 = vmatprep.subr.bf16.mxu1 %v5562_v21  ;;  %v5635_v20 = vld [vmem:[%s7615_s14 + $0x320] ss:$28 sps:$4 sm:$0xff]   ;;  %v5638_v21 = vld [vmem:[%s7615_s14 + $0x4a8] ss:$28 sps:$4 sm:$0xff]  }
 0x4f3   :  { %4084 = vmatpush1.bf16.msra.mxu0 %v5557_v22  ;;  %4125 = vmatpush1.bf16.msra.mxu1 %v5560_v12  ;;  %v5643_v22 = vld [vmem:[%s7615_s14 + $0x2ec] ss:$28 sps:$4 sm:$0xff]   ;;  %v5646_v12 = vld [vmem:[%s7615_s14 + $0x474] ss:$28 sps:$4 sm:$0xff]  }
 0x4f4   :  { %4085 = vmatprep.subr.bf16.mxu0 %v5565_v23  ;;  %4126 = vmatprep.subr.bf16.mxu1 %v5568_v5  ;;  %v5641_v23 = vld [vmem:[%s7615_s14 + $0x2e8] ss:$28 sps:$4 sm:$0xff]   ;;  %v5644_v5 = vld [vmem:[%s7615_s14 + $0x470] ss:$28 sps:$4 sm:$0xff]  }
 0x4f7   :  { %4086 = vmatpush1.bf16.msra.mxu0 %v5563_v8  ;;  %4127 = vmatpush1.bf16.msra.mxu1 %v5566_v24  ;;  %v5649_v8 = vld [vmem:[%s7615_s14 + $0x2b4] ss:$28 sps:$4 sm:$0xff]   ;;  %v5652_v24 = vld [vmem:[%s7615_s14 + $0x43c] ss:$28 sps:$4 sm:$0xff]  }
 0x4f8   :  { %4087 = vmatprep.subr.bf16.mxu0 %v5571_v25  ;;  %4128 = vmatprep.subr.bf16.mxu1 %v5574_v26  ;;  %v5647_v25 = vld [vmem:[%s7615_s14 + $0x2b0] ss:$28 sps:$4 sm:$0xff]   ;;  %v5650_v26 = vld [vmem:[%s7615_s14 + $0x438] ss:$28 sps:$4 sm:$0xff]  }
 0x4fb   :  { %4088 = vmatpush1.bf16.msra.mxu0 %v5569_v19  ;;  %4129 = vmatpush1.bf16.msra.mxu1 %v5572_v27  ;;  %v5655_v19 = vld [vmem:[%s7615_s14 + $0x27c] ss:$28 sps:$4 sm:$0xff]   ;;  %v5658_v27 = vld [vmem:[%s7615_s14 + $0x404] ss:$28 sps:$4 sm:$0xff]  }
 0x4fc   :  { %4089 = vmatprep.subr.bf16.mxu0 %v5577_v28  ;;  %4144 = vmatprep.subr.bf16.mxu1 %v5580_v52  ;;  %v5653_v28 = vld [vmem:[%s7615_s14 + $0x278] ss:$28 sps:$4 sm:$0xff]   ;;  %v5656_v52 = vld [vmem:[%s7615_s14 + $0x400] ss:$28 sps:$4 sm:$0xff]  }
 0x4ff   :  { %4090 = vmatpush2.bf16.msra.mxu0 %v5575_v29  ;;  %4145 = vmatpush2.bf16.msra.mxu1 %v5578_v30  ;;  %v5661_v29 = vld [vmem:[%s7615_s14 + $0x244] ss:$28 sps:$4 sm:$0xff]   ;;  %v5664_v30 = vld [vmem:[%s7615_s14 + $0x3cc] ss:$28 sps:$4 sm:$0xff]  }
 0x500   :  { %4091 = vmatprep.subr.bf16.mxu0 %v5583_v31  ;;  %4155 = vmatprep.subr.bf16.mxu1 %v5586_v32  ;;  %v5659_v31 = vld [vmem:[%s7615_s14 + $0x240] ss:$28 sps:$4 sm:$0xff]   ;;  %v5662_v32 = vld [vmem:[%s7615_s14 + $0x3c8] ss:$28 sps:$4 sm:$0xff]  }
 0x502   :  { %4147 = vmatmul.mubr.bf16.vlgmr.msra.gmra.mxu1 %v7178_v63 }
 0x503   :  { %4092 = vmatpush2.bf16.msra.mxu0 %v5581_v33  ;;  %4156 = vmatpush1.bf16.msra.mxu1 %v5584_v34  ;;  %v5667_v33 = vld [vmem:[%s7615_s14 + $0x20c] ss:$28 sps:$4 sm:$0xff]   ;;  %v5670_v34 = vld [vmem:[%s7615_s14 + $0x394] ss:$28 sps:$4 sm:$0xff]  }
 0x504   :  { %4187 = vmatprep.mubr.bf16.mxu1 %v7166_v58  ;;  %4093 = vmatprep.subr.bf16.mxu0 %v5589_v35  ;;  %v5665_v35 = vld [vmem:[%s7615_s14 + $0x208] ss:$28 sps:$4 sm:$0xff]  }
 0x505   :  { %4157 = vmatprep.subr.bf16.mxu1 %v5592_v36  ;;  %v5668_v36 = vld [vmem:[%s7615_s14 + $0x390] ss:$28 sps:$4 sm:$0xff]  }
 0x507   :  { %4094 = vmatpush2.bf16.msra.mxu0 %v5587_v37  ;;  %4158 = vmatpush1.bf16.msra.mxu1 %v5590_v38  ;;  %v5673_v37 = vld [vmem:[%s7615_s14 + $0x1d4] ss:$28 sps:$4 sm:$0xff]  }
 0x508   :  { %4095 = vmatprep.subr.bf16.mxu0 %v5595_v39  ;;  %4159 = vmatprep.subr.bf16.mxu1 %v5598_v40  ;;  %v5676_v38 = vld [vmem:[%s7615_s14 + $0x554] ss:$28 sps:$4 sm:$0xff]  }
 0x509   :  { %v5671_v39 = vld [vmem:[%s7615_s14 + $0x1d0] ss:$28 sps:$4 sm:$0xff]  }
 0x50a   :  { %v5674_v40 = vld [vmem:[%s7615_s14 + $0x550] ss:$28 sps:$4 sm:$0xff]  }
 0x50b   :  { %4096 = vmatpush2.bf16.msra.mxu0 %v5593_v41  ;;  %4160 = vmatpush1.bf16.msra.mxu1 %v5596_v42  ;;  %v5677_v41 = vld [vmem:[%s7615_s14 + $0x360] ss:$28 sps:$4 sm:$0xff]  }
 0x50c   :  { %4097 = vmatprep.subr.bf16.mxu0 %v5601_v44  ;;  %4161 = vmatprep.subr.bf16.mxu1 %v5604_v46  ;;  %v5678_v42 = vld [vmem:[%s7615_s14 + $0x1a0] ss:$28 sps:$4 sm:$0xff]   ;;  %v5680_v46 = vld [vmem:[%s7615_s14 + $0x328] ss:$28 sps:$4 sm:$0xff]  }
 0x50d   :  { %v5679_v44 = vld [vmem:[%s7615_s14 + $0x520] ss:$28 sps:$4 sm:$0xff]  }
 0x50f   :  { %4098 = vmatpush2.bf16.msra.mxu0 %v5599_v47  ;;  %4162 = vmatpush1.bf16.msra.mxu1 %v5602_v49  ;;  %v5681_v47 = vld [vmem:[%s7615_s14 + $0x168] ss:$28 sps:$4 sm:$0xff]  }
 0x510   :  { %4099 = vmatprep.subr.bf16.mxu0 %v5607_v50  ;;  %4163 = vmatprep.subr.bf16.mxu1 %v5610_v54  ;;  %v5682_v49 = vld [vmem:[%s7615_s14 + $0x4e8] ss:$28 sps:$4 sm:$0xff]   ;;  %v5683_v50 = vld [vmem:[%s7615_s14 + $0x2f0] ss:$28 sps:$4 sm:$0xff]   ;;  %v5686_v54 = vld [vmem:[%s7615_s14 + $0x2b8] ss:$28 sps:$4 sm:$0xff]  }
 0x513   :  { %4100 = vmatpush2.bf16.msra.mxu0 %v5605_v55  ;;  %4164 = vmatpush1.bf16.msra.mxu1 %v5608_v57  ;;  %v5687_v55 = vld [vmem:[%s7615_s14 + $0xf8] ss:$28 sps:$4 sm:$0xff]  }
 0x514   :  { %4101 = vmatprep.subr.bf16.mxu0 %v5613_v60  ;;  %4165 = vmatprep.subr.bf16.mxu1 %v5616_v61  ;;  %v5688_v57 = vld [vmem:[%s7615_s14 + $0x478] ss:$28 sps:$4 sm:$0xff]   ;;  %v5689_v60 = vld [vmem:[%s7615_s14 + $0x280] ss:$28 sps:$4 sm:$0xff]  }
 0x515   :  { %v5690_v61 = vld [vmem:[%s7615_s14 + $0xc0] ss:$28 sps:$4 sm:$0xff]  }
 0x517   :  { %4102 = vmatpush2.bf16.msra.mxu0 %v5611_v0  ;;  %4166 = vmatpush1.bf16.msra.mxu1 %v5614_v1  ;;  %v5691_v0 = vld [vmem:[%s7615_s14 + $0x440] ss:$28 sps:$4 sm:$0xff]   ;;  %v5692_v1 = vld [vmem:[%s7615_s14 + $0x248] ss:$28 sps:$4 sm:$0xff]  }
 0x518   :  { %4103 = vmatprep.subr.bf16.mxu0 %v5619_v2  ;;  %4167 = vmatprep.subr.bf16.mxu1 %v5622_v3  ;;  %v5693_v2 = vld [vmem:[%s7615_s14 + $0x88] ss:$28 sps:$4 sm:$0xff]  }
 0x519   :  { %v5694_v3 = vld [vmem:[%s7615_s14 + $0x408] ss:$28 sps:$4 sm:$0xff]  }
 0x51b   :  { %4104 = vmatpush2.bf16.msra.mxu0 %v5617_v4  ;;  %4168 = vmatpush1.bf16.msra.mxu1 %v5620_v6  ;;  %v5695_v4 = vld [vmem:[%s7615_s14 + $0x210] ss:$28 sps:$4 sm:$0xff]  }
 0x51c   :  { %4169 = vmatprep.subr.bf16.mxu1 %v5625_v7  ;;  %4196 = vmatprep.subr.bf16.mxu0 %v5628_v9  ;;  %v5696_v6 = vld [vmem:[%s7615_s14 + $0x50] ss:$28 sps:$4 sm:$0xff]   ;;  %v5698_v9 = vld [vmem:[%s7615_s14 + $0x1d8] ss:$28 sps:$4 sm:$0xff]  }
 0x51d   :  { %v5697_v7 = vld [vmem:[%s7615_s14 + $0x3d0] ss:$28 sps:$4 sm:$0xff]  }
 0x51e   :  { %4106 = vmatmul.mubr.bf16.vlgmr.msra.gmra.mxu0 %v7176_v62 }
 0x51f   :  { %4170 = vmatpush1.bf16.msra.mxu1 %v5623_v10  ;;  %4197 = vmatpush1.bf16.msra.mxu0 %v5626_v11  ;;  %v5699_v10 = vld [vmem:[%s7615_s14 + $0x18] ss:$28 sps:$4 sm:$0xff]  }
 0x520   :  { %4934 = vmatprep.mubr.msk.bf16.mxu0 %vm1285_vm0, %v7168_v59  ;;  %4171 = vmatprep.subr.bf16.mxu1 %v5631_v56  ;;  %v5700_v11 = vld [vmem:[%s7615_s14 + $0x398] ss:$28 sps:$4 sm:$0xff]  }
 0x521   :  { %4198 = vmatprep.subr.bf16.mxu0 %v5634_v13  ;;  %v5701_v56 = vld [vmem:[%s7615_s14 + $0x558] ss:$28 sps:$4 sm:$0xff]   ;;  %v7575_v13 = vld [vmem:[%s7616_s15] sm:$0x7f] }
 0x523   :  { %4172 = vmatpush2.bf16.msra.mxu1 %v5629_v14  ;;  %4199 = vmatpush1.bf16.msra.mxu0 %v5632_v15  ;;  %v3056_v14 = vrot.slane %v7575_v13, %v6628_v51  ;;  %v3060_v15 = vrot.slane %v7575_v13, %v6631_v53 }
 0x524   :  { %4173 = vmatprep.subr.bf16.mxu1 %v5637_v16  ;;  %4200 = vmatprep.subr.bf16.mxu0 %v5640_v17 }
 0x527   :  { %4174 = vmatpush2.bf16.msra.mxu1 %v5635_v20  ;;  %4201 = vmatpush1.bf16.msra.mxu0 %v5638_v21 }
 0x528   :  { %4175 = vmatprep.subr.bf16.mxu1 %v5643_v22  ;;  %4202 = vmatprep.subr.bf16.mxu0 %v5646_v12 }
 0x52b   :  { %4176 = vmatpush2.bf16.msra.mxu1 %v5641_v23  ;;  %4203 = vmatpush1.bf16.msra.mxu0 %v5644_v5 }
 0x52c   :  { %4177 = vmatprep.subr.bf16.mxu1 %v5649_v8  ;;  %4204 = vmatprep.subr.bf16.mxu0 %v5652_v24 }
 0x52f   :  { %4178 = vmatpush2.bf16.msra.mxu1 %v5647_v25  ;;  %4205 = vmatpush1.bf16.msra.mxu0 %v5650_v26 }
 0x530   :  { %4179 = vmatprep.subr.bf16.mxu1 %v5655_v19  ;;  %4206 = vmatprep.subr.bf16.mxu0 %v5658_v27 }
 0x533   :  { %4180 = vmatpush2.bf16.msra.mxu1 %v5653_v28  ;;  %4207 = vmatpush1.bf16.msra.mxu0 %v5656_v52 }
 0x534   :  { %4181 = vmatprep.subr.bf16.mxu1 %v5661_v29  ;;  %4208 = vmatprep.subr.bf16.mxu0 %v5664_v30 }
 0x537   :  { %4182 = vmatpush2.bf16.msra.mxu1 %v5659_v31  ;;  %4209 = vmatpush1.bf16.msra.mxu0 %v5662_v32 }
 0x538   :  { %4183 = vmatprep.subr.bf16.mxu1 %v5667_v33  ;;  %4210 = vmatprep.subr.bf16.mxu0 %v5670_v34 }
 0x53b   :  { %4184 = vmatpush2.bf16.msra.mxu1 %v5665_v35  ;;  %4211 = vmatpush1.bf16.msra.mxu0 %v5668_v36 }
 0x53c   :  { %4185 = vmatprep.subr.bf16.mxu1 %v5673_v37  ;;  %4226 = vmatprep.subr.bf16.mxu0 %v5676_v38 }
 0x53f   :  { %4186 = vmatpush2.bf16.msra.mxu1 %v5671_v39  ;;  %4227 = vmatpush2.bf16.msra.mxu0 %v5674_v40 }
 0x540   :  { %4943 = vmatprep.subr.bf16.mxu0 %v5677_v41  ;;  %4277 = vmatprep.subr.bf16.mxu1 %v5796_v18 }
 0x542   :  { %4188 = vmatmul.mubr.bf16.vlgmr.msra.gmra.mxu1 %v7176_v62  ;;  %4229 = vmatmul.mubr.bf16.vlgmr.msra.gmra.mxu0 %v7178_v63 }
 0x543   :  { %4944 = vmatpush3.bf16.msra.mxu0 %v5678_v42  ;;  %4269 = vmatprep.mubr.bf16.mxu0 %v7166_v58  ;;  %v5684_v58 = vld [vmem:[%s7615_s14 + $0x130] ss:$28 sps:$4 sm:$0xff]  }
 0x544   :  { %4278 = vmatpush1.bf16.msra.mxu1 %v5679_v44  ;;  %4935 = vmatprep.mubr.msk.bf16.mxu1 %vm1285_vm0, %v7168_v59  ;;  %v5685_v59 = vld [vmem:[%s7615_s14 + $0x4b0] ss:$28 sps:$4 sm:$0xff]   ;;  %s5797_s14 = smov [#allocation4]  }
 0x545   :  { %4945 = vmatprep.subr.bf16.mxu0 %v5680_v46  ;;  %4279 = vmatprep.subr.bf16.mxu1 %v5796_v18  ;;  %s4384_s15 = sshll.u32 %s5797_s14, 4  ;;  %s4385_s15 = int_to_ptr.vmem [resolvable:$true] %s4384_s15 }
 0x546   :  { %s5732_s23 = scalar_lea.vmem %s4385_s15, 128  ;;  %p5737_p1 = scmp.lt.s32.totalorder %s4385_s15, %s4385_s15 }
 0x547   :  { %4946 = vmatpush3.bf16.msra.mxu0 %v5681_v47  ;;  %p5733_p0 = scmp.ne.s32.totalorder %s4385_s15, %s5732_s23  ;;  %p5738_p2 = scmp.lt.s32.totalorder %s5732_s23, %s5732_s23 }
 0x548   :  { %4280 = vmatpush1.bf16.msra.mxu1 %v5682_v49  ;;  %4947 = vmatprep.subr.bf16.mxu0 %v5683_v50 }
 0x549   :  { %4281 = vmatprep.subr.bf16.mxu1 %v5796_v18  ;;  %p5739_p3 = por %p5738_p2, %p5737_p1 }
 0x54b   :  { %4948 = vmatpush3.bf16.msra.mxu0 %v5684_v58  ;;  %p5740_p4 = pnand %p5739_p3, %p5733_p0 }
 0x54c   :  { %4282 = vmatpush1.bf16.msra.mxu1 %v5685_v59  ;;  %4949 = vmatprep.subr.bf16.mxu0 %v5686_v54 }
 0x54d   :  { %4283 = vmatprep.subr.bf16.mxu1 %v5796_v18 }
 0x54f   :  { %4950 = vmatpush3.bf16.msra.mxu0 %v5687_v55 }
 0x550   :  { %4284 = vmatpush1.bf16.msra.mxu1 %v5688_v57  ;;  %4951 = vmatprep.subr.bf16.mxu0 %v5689_v60 }
 0x551   :  { %4285 = vmatprep.subr.bf16.mxu1 %v5796_v18 }
 0x553   :  { %4952 = vmatpush3.bf16.msra.mxu0 %v5690_v61 }
 0x554   :  { %4286 = vmatpush1.bf16.msra.mxu1 %v5691_v0  ;;  %4953 = vmatprep.subr.bf16.mxu0 %v5692_v1 }
 0x555   :  { %4287 = vmatprep.subr.bf16.mxu1 %v5796_v18 }
 0x557   :  { %4954 = vmatpush3.bf16.msra.mxu0 %v5693_v2 }
 0x558   :  { %4288 = vmatpush1.bf16.msra.mxu1 %v5694_v3  ;;  %4955 = vmatprep.subr.bf16.mxu0 %v5695_v4 }
 0x559   :  { %4289 = vmatprep.subr.bf16.mxu1 %v5796_v18 }
 0x55b   :  { %4956 = vmatpush3.bf16.msra.mxu0 %v5696_v6 }
 0x55c   :  { %4290 = vmatpush1.bf16.msra.mxu1 %v5697_v7  ;;  %4957 = vmatprep.subr.bf16.mxu0 %v5698_v9 }
 0x55d   :  { %4291 = vmatprep.subr.bf16.mxu1 %v5796_v18 }
 0x55f   :  { %4958 = vmatpush3.bf16.msra.mxu0 %v5699_v10 }
 0x560   :  { %4292 = vmatpush1.bf16.msra.mxu1 %v5700_v11 }
 0x561   :  { %4307 = vmatprep.subr.bf16.mxu1 %v5796_v18 }
 0x562   :  { %4270 = vmatmul.mubr.bf16.vlgmr.msra.gmra.mxu0 %v7176_v62 }
 0x564   :  { %4308 = vmatpush2.bf16.msra.mxu1 %v5701_v56 }
 0x567   :  { %4310 = vmatmul.mubr.bf16.vlgmr.msra.gmra.mxu1 %v7178_v63 }
 0x59e   :  { %v4025_v16 = vpop.f32.mrf.mxu1  ;;  %v4066_v17 = vpop.f32.mrf.mxu0 }
 0x59f   :  { %v4026_v20 = vadd.f32 %v4025_v16, %v3056_v14 }
 0x5a0   :  { %v4027_v18 = vpop.f32.mrf.mxu1  ;;  %v4068_v21 = vpop.f32.mrf.mxu0 }
 0x5a1   :  { %v4067_v62 = vadd.f32 %v4066_v17, %v4026_v20  ;;  %v4028_v22 = vadd.f32 %v4027_v18, %v3060_v15 }
 0x5a2   :  { %v4029_v12 = vpop.f32.mrf.mxu1  ;;  %v4070_v63 = vpop.f32.mrf.mxu0 }
 0x5a3   :  { %v4936_v23 = vmul.f32 -1.442695, %v4067_v62  ;;  %v4069_v5 = vadd.f32 %v4068_v21, %v4028_v22 }
 0x5a4   :  { %v4030_v8 = vpop.f32.mrf.mxu1  ;;  %v4071_v24 = vpop.f32.mrf.mxu0 }
 0x5a5   :  { %5704 = vpow2.f32 %v4936_v23  ;;  %v4937_v25 = vmul.f32 -1.442695, %v4069_v5 }
 0x5a7   :  { %5706 = vpow2.f32 %v4937_v25 }
 0x5b2   :  { %v5705_v51 = vpop.eup %5704 }
 0x5b3   :  { %v4338_v26 = vadd.f32 1.0, %v5705_v51 }
 0x5b4   :  { %v5707_v19 = vpop.eup %5706 }
 0x5b5   :  { %5708 = vrcp.f32 %v4338_v26  ;;  %v4339_v53 = vadd.f32 1.0, %v5707_v19 }
 0x5b7   :  { %5710 = vrcp.f32 %v4339_v53 }
 0x5c2   :  { %v5709_v27 = vpop.eup %5708  ;;  %v4148_v28 = vpop.f32.mrf.mxu1 }
 0x5c3   :  { %4359 = vst [vmem:[#allocation2] sm:$0xff] %v5709_v27 }
 0x5c4   :  { %v5711_v52 = vpop.eup %5710  ;;  %v4150_v29 = vpop.f32.mrf.mxu1 }
 0x5c5   :  { %4360 = vst [vmem:[#allocation2 + $0x8] sm:$0xff] %v5711_v52 }
 0x5c6   :  { %v4152_v30 = vpop.f32.mrf.mxu1 }
 0x5c8   :  { %v4153_v31 = vpop.f32.mrf.mxu1 }
 0x5c9   :  { %5743 = shalt.err (!%p5740_p4)
}
 0x5ca   :  { %4387 = dma.vmem_to_hbm [thread:$0]  %s4385_s15, 128, %s7618_s17, [#allocation5]  }
 0x5cb   :  { %s5798_s6 = smov [#allocation6]  }
 0x5cc   :  { %s4394_s8 = sshll.u32 %s5798_s6, 4  ;;  %s4395_s8 = int_to_ptr.vmem [resolvable:$true] %s4394_s8 }
 0x5cd   :  { %s5752_s1 = scalar_lea.vmem %s4395_s8, 128  ;;  %p5757_p6 = scmp.lt.s32.totalorder %s4395_s8, %s4395_s8 }
 0x5ce   :  { %p5753_p5 = scmp.ne.s32.totalorder %s4395_s8, %s5752_s1  ;;  %p5758_p7 = scmp.lt.s32.totalorder %s5752_s1, %s5752_s1 }
 0x5d0   :  { %p5759_p8 = por %p5758_p7, %p5757_p6 }
 0x5d2   :  { %p5760_p9 = pnand %p5759_p8, %p5753_p5 }
 0x5d4   :  { %5763 = shalt.err (!%p5760_p9)
}
 0x5d5   :  { %4397 = dma.vmem_to_hbm [thread:$0]  %s4395_s8, 128, %s7619_s18, [#allocation5]   ;;  %v3064_v32 = vrot.slane %v7575_v13, %v6699_v43  ;;  %v3068_v33 = vrot.slane %v7575_v13, %v6702_v45  ;;  %v3071_v45 = vsub.s32 4, %v6619_v48  ;;  %v3075_v50 = vsub.s32 5, %v6619_v48 }
 0x5d6   :  { %v3079_v20 = vsub.s32 6, %v6619_v48  ;;  %s5799_s17 = smov [#allocation2]  }
 0x5d7   :  { %v3072_v58 = vrot.slane %v7575_v13, %v3071_v45  ;;  %v3076_v59 = vrot.slane %v7575_v13, %v3075_v50  ;;  %s4374_s18 = sshll.u32 %s5799_s17, 4  ;;  %s4375_s18 = int_to_ptr.vmem [resolvable:$true] %s4374_s18 }
 0x5d8   :  { %v3080_v21 = vrot.slane %v7575_v13, %v3079_v20  ;;  %s5772_s22 = scalar_lea.vmem %s4375_s18, 896  ;;  %p5777_p11 = scmp.lt.s32.totalorder %s4375_s18, %s4375_s18 }
 0x5d9   :  { %p5773_p10 = scmp.ne.s32.totalorder %s4375_s18, %s5772_s22  ;;  %p5778_p12 = scmp.lt.s32.totalorder %s5772_s22, %s5772_s22 }
 0x5db   :  { %p5779_p13 = por %p5778_p12, %p5777_p11 }
 0x5dd   :  { %p5780_p0 = pnand %p5779_p13, %p5773_p10 }
 0x5de   :  { %v4107_v34 = vpop.f32.mrf.mxu0 }
 0x5df   :  { %v4108_v35 = vadd.f32 %v4107_v34, %v3064_v32 }
 0x5e0   :  { %v4109_v36 = vpop.f32.mrf.mxu0 }
 0x5e1   :  { %v4149_v37 = vadd.f32 %v4148_v28, %v4108_v35  ;;  %v4110_v38 = vadd.f32 %v4109_v36, %v3068_v33 }
 0x5e2   :  { %v4111_v39 = vpop.f32.mrf.mxu0 }
 0x5e3   :  { %v4938_v40 = vmul.f32 -1.442695, %v4149_v37  ;;  %v4151_v41 = vadd.f32 %v4150_v29, %v4110_v38 }
 0x5e4   :  { %v4112_v42 = vpop.f32.mrf.mxu0 }
 0x5e5   :  { %5712 = vpow2.f32 %v4938_v40  ;;  %v4939_v44 = vmul.f32 -1.442695, %v4151_v41 }
 0x5e7   :  { %5714 = vpow2.f32 %v4939_v44 }
 0x5f2   :  { %v5713_v46 = vpop.eup %5712 }
 0x5f3   :  { %v4340_v47 = vadd.f32 1.0, %v5713_v46 }
 0x5f4   :  { %v5715_v49 = vpop.eup %5714 }
 0x5f5   :  { %5716 = vrcp.f32 %v4340_v47  ;;  %v4341_v43 = vadd.f32 1.0, %v5715_v49 }
 0x5f7   :  { %5718 = vrcp.f32 %v4341_v43 }
 0x602   :  { %v5717_v54 = vpop.eup %5716  ;;  %v4189_v55 = vpop.f32.mrf.mxu1 }
 0x603   :  { %v4230_v57 = vpop.f32.mrf.mxu0  ;;  %4361 = vst [vmem:[#allocation2 + $0x10] sm:$0xff] %v5717_v54  ;;  %v4190_v60 = vadd.f32 %v4189_v55, %v3072_v58 }
 0x604   :  { %v5719_v61 = vpop.eup %5718  ;;  %v4191_v0 = vpop.f32.mrf.mxu1 }
 0x605   :  { %v4232_v1 = vpop.f32.mrf.mxu0  ;;  %4362 = vst [vmem:[#allocation2 + $0x18] sm:$0xff] %v5719_v61  ;;  %v4231_v2 = vadd.f32 %v4230_v57, %v4190_v60  ;;  %v4192_v3 = vadd.f32 %v4191_v0, %v3076_v59 }
 0x606   :  { %v4193_v4 = vpop.f32.mrf.mxu1 }
 0x607   :  { %v4234_v6 = vpop.f32.mrf.mxu0  ;;  %v4940_v7 = vmul.f32 -1.442695, %v4231_v2  ;;  %v4233_v9 = vadd.f32 %v4232_v1, %v4192_v3 }
 0x608   :  { %v4194_v10 = vpop.f32.mrf.mxu1 }
 0x609   :  { %v4235_v11 = vpop.f32.mrf.mxu0  ;;  %5720 = vpow2.f32 %v4940_v7  ;;  %v4941_v56 = vmul.f32 -1.442695, %v4233_v9 }
 0x60b   :  { %5722 = vpow2.f32 %v4941_v56 }
 0x616   :  { %v5721_v14 = vpop.eup %5720 }
 0x617   :  { %v4342_v15 = vadd.f32 1.0, %v5721_v14 }
 0x618   :  { %v5723_v16 = vpop.eup %5722 }
 0x619   :  { %5724 = vrcp.f32 %v4342_v15  ;;  %v4343_v17 = vadd.f32 1.0, %v5723_v16 }
 0x61b   :  { %5726 = vrcp.f32 %v4343_v17 }
 0x622   :  { %v4959_v18 = vpop.f32.mrf.mxu0 }
 0x624   :  { %v4960_v62 = vpop.f32.mrf.mxu0 }
 0x625   :  { %v4961_v22 = vadd.f32 %v4960_v62, %v4959_v18 }
 0x626   :  { %v5725_v12 = vpop.eup %5724  ;;  %v4962_v63 = vpop.f32.mrf.mxu0 }
 0x627   :  { %4363 = vst [vmem:[#allocation2 + $0x20] sm:$0xff] %v5725_v12  ;;  %v4272_v23 = vadd.f32 %v4961_v22, %v3080_v21  ;;  %v4311_v5 = vpop.f32.mrf.mxu1 }
 0x628   :  { %v5727_v8 = vpop.eup %5726  ;;  %v4963_v24 = vpop.f32.mrf.mxu0 }
 0x629   :  { %4364 = vst [vmem:[#allocation2 + $0x28] sm:$0xff] %v5727_v8  ;;  %v4312_v25 = vadd.f32 %v4311_v5, %v4272_v23  ;;  %v4313_v51 = vpop.f32.mrf.mxu1 }
 0x62b   :  { %v4942_v26 = vmul.f32 -1.442695, %v4312_v25  ;;  %v4314_v19 = vpop.f32.mrf.mxu1 }
 0x62d   :  { %5728 = vpow2.f32 %v4942_v26  ;;  %v4315_v53 = vpop.f32.mrf.mxu1 }
 0x63a   :  { %v5729_v48 = vpop.eup %5728 }
 0x63b   :  { %v4344_v27 = vadd.f32 1.0, %v5729_v48 }
 0x63d   :  { %5730 = vrcp.f32 %v4344_v27 }
 0x64a   :  { %v5731_v13 = vpop.eup %5730 }
 0x64b   :  { %4365 = vst.msk [vmem:[#allocation2 + $0x30] sm:$0xff] %vm1285_vm0, %v5731_v13 }
 0x64c   :  { %5783 = shalt.err (!%p5780_p0)
}
 0x64d   :  { %4377 = dma.vmem_to_hbm [thread:$0]  %s4375_s18, 896, %s7617_s16, [#allocation3]  }
 0x64e   :  { %5792 = dma.done.wait [#allocation3], 896  }
 0x64f   :  { %5793 = vsyncadd [#allocation3], 4294966400 }
 0x650   :  { %5794 = dma.done.wait [#allocation5], 256  }
 0x651   :  { %5795 = vsyncadd [#allocation5], 4294967040 }
 0x652   :  { %4407 = vsyncpa [#allocation3], 1 }
 0x653   :  { %4408 = vsyncpa [#allocation5], 1 }

</bundles_post_ra>
